<compile_context>
chip_gen: v7x
topology: tpu7x:2x2x1
jax: 0.10.0
libtpu: 0.0.40
codegen_flags: <defaults>
</compile_context>

<pallas_src>
import numpy as np
import jax
import jax.numpy as jnp
from jax.experimental import pallas as pl
from jax.experimental.pallas import tpu as pltpu


# Tap order k = ky*3 + kx, offsets (dy, dx) with dy = ky - 1, dx = kx - 1.
_OFFSETS = tuple((dy, dx) for dy in (-1, 0, 1) for dx in (-1, 0, 1))


def _round_up(v, m):
  return ((v + m - 1) // m) * m


# ----------------------------------------------------------------------------
# Kernel builder + pallas_call wrapper.
# ----------------------------------------------------------------------------
def build_resblock_gc(N, C, Co, groups, H, W, skip_mode, *,
                      mxu_dtype=jnp.float32, approx_silu=False):
  L = H * W
  Cmid = 3 * Co
  Cmid_pad = _round_up(Cmid, 8)
  Co_pad = _round_up(Co, 8)

  # Batch blocking: keep the grid axis "parallel" and even (both v7x TCs busy),
  # and amortize the ~0.35us/step grid overhead over NB images per step.
  grid_n = 2 if (N % 2 == 0 and N >= 2) else N
  nb = N // grid_n

  def _silu(v):
    # sigmoid = 1 / (1 + exp(-v)); exp + reciprocal both land on the EUP slot.
    # approx=False keeps the exact path bit-clean for the correctness check.
    return v * pl.reciprocal(1.0 + jnp.exp(-v), approx=approx_silu)

  def _group_norm(v, gamma, beta, avg, eps=1e-5):
    # Lane-reduce first (XLU), then the tiny (C,C)@(C,1) group-average dot.
    s1 = jnp.sum(v, axis=1, keepdims=True)                          # (C, 1)
    mean = jnp.dot(avg, s1, preferred_element_type=jnp.float32)     # (C, 1)
    vc = v - mean
    s2 = jnp.sum(vc * vc, axis=1, keepdims=True)
    var = jnp.dot(avg, s2, preferred_element_type=jnp.float32)
    return vc * (jax.lax.rsqrt(var + eps) * gamma) + beta

  def _conv3x3(v, w_stack, bias, masks, c_out, c_out_pad):
    """Grouped 3x3 conv: one stacked matmul + 9 lane rolls + boundary masks.

    v:        (Cin, L) f32 activations
    w_stack:  (9*c_out_pad, Cin) block-diagonal dense weights, all taps stacked
    bias:     (c_out, 1)
    masks:    list of 9 (1, L) 0/1 boundary masks (tap order = _OFFSETS)
    """
    t = jnp.dot(w_stack, v.astype(mxu_dtype),
                preferred_element_type=jnp.float32)                 # (9*c_out_pad, L)
    acc = jnp.zeros((c_out_pad, L), jnp.float32)
    for k, (dy, dx) in enumerate(_OFFSETS):
      tk = t[k * c_out_pad:(k + 1) * c_out_pad, :]                  # 8-aligned slice
      off = dy * W + dx
      if off != 0:
        # want tk'[:, p] = tk[:, p + off]  ==  roll(tk, -off); the lanes that wrap
        # around are exactly the out-of-image neighbours, zeroed by the mask.
        tk = pltpu.roll(tk, shift=(-off) % L, axis=1) * masks[k]
      acc = acc + tk
    return acc[:c_out, :] + bias

  def kernel(*refs):
    if skip_mode == "identity":
      (x_ref, g1_ref, be1_ref, avg1_ref, w1_ref, b1_ref,
       g2_ref, be2_ref, avg2_ref, w2_ref, b2_ref, m_ref, o_ref) = refs
      ws_ref = bs_ref = None
    else:
      (x_ref, g1_ref, be1_ref, avg1_ref, w1_ref, b1_ref,
       g2_ref, be2_ref, avg2_ref, w2_ref, b2_ref,
       ws_ref, bs_ref, m_ref, o_ref) = refs

    # Hoist constant loads out of the per-image loop.
    g1, be1, avg1 = g1_ref[...], be1_ref[...], avg1_ref[...]
    g2, be2, avg2 = g2_ref[...], be2_ref[...], avg2_ref[...]
    w1, b1 = w1_ref[...], b1_ref[...]
    w2, b2 = w2_ref[...], b2_ref[...]
    masks = [m_ref[k] for k in range(9)]                            # (1, L) each

    for b in range(nb):         # static, small in-block batch loop
      x = x_ref[b]                                                  # (C, L) f32
      h = _group_norm(x, g1, be1, avg1)
      h = _silu(h)
      h = _conv3x3(h, w1, b1, masks, Cmid, Cmid_pad)                # (3*Co, L)
      h = _group_norm(h, g2, be2, avg2)
      h = _silu(h)
      # nn.Dropout(p): identity in the inference forward pass.
      h = _conv3x3(h, w2, b2, masks, Co, Co_pad)                    # (Co, L)

      if skip_mode == "identity":
        skip = x
      elif skip_mode == "conv1x1":
        skip = jnp.dot(ws_ref[...], x.astype(mxu_dtype),
                       preferred_element_type=jnp.float32) + bs_ref[...]
      else:  # "conv3x3"
        skip = _conv3x3(x, ws_ref[...], bs_ref[...], masks, Co, Co_pad)
      o_ref[b] = skip + h

  def _const_spec(shape):
    nd = len(shape)
    return pl.BlockSpec(shape, lambda n, _nd=nd: (0,) * _nd)

  def call(x_nchw, kp):
    x2 = x_nchw.reshape(N, C, L).astype(jnp.float32)
    consts = [kp["gn1_g"], kp["gn1_b"], kp["avg1"],
              kp["w1s"].astype(mxu_dtype), kp["b1"],
              kp["gn2_g"], kp["gn2_b"], kp["avg2"],
              kp["w2s"].astype(mxu_dtype), kp["b2"]]
    if skip_mode != "identity":
      consts += [kp["wss"].astype(mxu_dtype), kp["bs"]]
    consts += [kp["masks"]]
    args = [x2] + consts

    in_specs = [pl.BlockSpec((nb, C, L), lambda n: (n, 0, 0))]
    in_specs += [_const_spec(a.shape) for a in consts]

    out = pl.pallas_call(
        kernel,
        out_shape=jax.ShapeDtypeStruct((N, Co, L), jnp.float32),
        grid=(grid_n,),
        in_specs=in_specs,
        out_specs=pl.BlockSpec((nb, Co, L), lambda n: (n, 0, 0)),
        compiler_params=pltpu.CompilerParams(
            dimension_semantics=("parallel",)),
    )(*args)
    return out.reshape(N, Co, H, W)

  return call


# ----------------------------------------------------------------------------
# Parameter construction (plain numpy / JAX glue, all offline).
# ----------------------------------------------------------------------------
def _stack_taps_blockdiag(w, groups, c_in, c_out_pad):
  """Torch grouped KxK weight (Cout, Cin//G, K, K) -> (K*K*c_out_pad, c_in)
  block-diagonal dense, all taps stacked along the output-row axis (rows of each
  tap padded with zeros up to c_out_pad so per-tap slices are sublane-aligned)."""
  w_np = np.asarray(w)
  c_out, cin_g, K, _ = w_np.shape
  cout_g = c_out // groups
  out = np.zeros((K * K, c_out_pad, c_in), np.float32)
  for g in range(groups):
    blk = w_np[g * cout_g:(g + 1) * cout_g]                   # (cout_g, cin_g, K, K)
    blk = np.transpose(blk, (2, 3, 0, 1)).reshape(K * K, cout_g, cin_g)
    out[:, g * cout_g:(g + 1) * cout_g, g * cin_g:(g + 1) * cin_g] = blk
  return jnp.asarray(out.reshape(K * K * c_out_pad, c_in))


def _dense_1x1(w, groups, c_in):
  """Torch grouped 1x1 weight (Cout, Cin//G, 1, 1) -> dense block-diag (Cout, Cin)."""
  w_np = np.asarray(w)[:, :, 0, 0]
  c_out = w_np.shape[0]
  cout_g, cin_g = c_out // groups, c_in // groups
  out = np.zeros((c_out, c_in), np.float32)
  for g in range(groups):
    out[g * cout_g:(g + 1) * cout_g, g * cin_g:(g + 1) * cin_g] = \
        w_np[g * cout_g:(g + 1) * cout_g]
  return jnp.asarray(out)


def _tap_masks(K, H, W):
  """(K*K, 1, L) 0/1 masks: 1 where the (dy,dx) neighbour lies inside the image."""
  L = H * W
  pad = (K - 1) // 2
  p = np.arange(L)
  y, x = p // W, p % W
  ms = []
  for ky in range(K):
    dy = ky - pad
    for kx in range(K):
      dx = kx - pad
      valid = (y + dy >= 0) & (y + dy < H) & (x + dx >= 0) & (x + dx < W)
      ms.append(valid.astype(np.float32))
  return jnp.asarray(np.stack(ms, axis=0)[:, None, :])


def _group_avg_matrix(C, groups, L):
  cg = C // groups
  gidx = np.arange(C) // cg
  A = (gidx[:, None] == gidx[None, :]).astype(np.float32) / float(cg * L)
  return jnp.asarray(A)


def init_params(key, channels, out_channels, use_conv, groups, H, W):
  C = channels
  Co = out_channels if out_channels else channels
  Cmid = 3 * Co
  G = groups
  Cmid_pad = _round_up(Cmid, 8)
  Co_pad = _round_up(Co, 8)
  L = H * W
  ks = jax.random.split(key, 10)
  raw = dict(
      gn1_g=1.0 + 0.1 * jax.random.normal(ks[0], (C,), jnp.float32),
      gn1_b=0.1 * jax.random.normal(ks[1], (C,), jnp.float32),
      w1=0.2 * jax.random.normal(ks[2], (Cmid, C // G, 3, 3), jnp.float32),
      b1=0.1 * jax.random.normal(ks[3], (Cmid,), jnp.float32),
      gn2_g=1.0 + 0.1 * jax.random.normal(ks[4], (Cmid,), jnp.float32),
      gn2_b=0.1 * jax.random.normal(ks[5], (Cmid,), jnp.float32),
      # NOTE: zero_module() zero-initializes this conv in the PyTorch __init__;
      # small random weights are used here so the kernel path is exercised.
      w2=0.2 * jax.random.normal(ks[6], (Co, Cmid // G, 3, 3), jnp.float32),
      b2=0.1 * jax.random.normal(ks[7], (Co,), jnp.float32),
  )
  if Co == C:
    skip_mode = "identity"
  else:
    Ks = 3 if use_conv else 1
    skip_mode = "conv3x3" if use_conv else "conv1x1"
    raw["ws"] = 0.2 * jax.random.normal(ks[8], (Co, C // G, Ks, Ks), jnp.float32)
    raw["bs"] = 0.1 * jax.random.normal(ks[9], (Co,), jnp.float32)

  kp = dict(
      gn1_g=raw["gn1_g"].reshape(C, 1), gn1_b=raw["gn1_b"].reshape(C, 1),
      avg1=_group_avg_matrix(C, G, L),
      w1s=_stack_taps_blockdiag(raw["w1"], G, C, Cmid_pad),
      b1=raw["b1"].reshape(Cmid, 1),
      gn2_g=raw["gn2_g"].reshape(Cmid, 1), gn2_b=raw["gn2_b"].reshape(Cmid, 1),
      avg2=_group_avg_matrix(Cmid, G, L),
      w2s=_stack_taps_blockdiag(raw["w2"], G, Cmid, Co_pad),
      b2=raw["b2"].reshape(Co, 1),
      masks=_tap_masks(3, H, W),
  )
  if skip_mode == "conv1x1":
    kp["wss"] = _dense_1x1(raw["ws"], G, C)
    kp["bs"] = raw["bs"].reshape(Co, 1)
  elif skip_mode == "conv3x3":
    kp["wss"] = _stack_taps_blockdiag(raw["ws"], G, C, Co_pad)
    kp["bs"] = raw["bs"].reshape(Co, 1)
  return raw, kp, skip_mode


# ----------------------------------------------------------------------------
# Pure-JAX reference (mirrors the PyTorch forward) for correctness checks.
# ----------------------------------------------------------------------------
def _gn_ref(x, gamma, beta, groups, eps=1e-5):
  N, C, H, W = x.shape
  xg = x.reshape(N, groups, C // groups, H, W)
  mean = xg.mean(axis=(2, 3, 4), keepdims=True)
  var = ((xg - mean) ** 2).mean(axis=(2, 3, 4), keepdims=True)
  xn = ((xg - mean) * jax.lax.rsqrt(var + eps)).reshape(N, C, H, W)
  return xn * gamma[None, :, None, None] + beta[None, :, None, None]


def _conv_ref(x, w, b, groups):
  K = w.shape[-1]
  pad = (K - 1) // 2
  y = jax.lax.conv_general_dilated(
      x, w, window_strides=(1, 1), padding=((pad, pad), (pad, pad)),
      dimension_numbers=("NCHW", "OIHW", "NCHW"), feature_group_count=groups,
      precision=jax.lax.Precision.HIGHEST)
  return y + b[None, :, None, None]


def resblock_gc_reference(x, raw, groups, skip_mode):
  h = _gn_ref(x, raw["gn1_g"], raw["gn1_b"], groups)
  h = jax.nn.silu(h)
  h = _conv_ref(h, raw["w1"], raw["b1"], groups)
  h = _gn_ref(h, raw["gn2_g"], raw["gn2_b"], groups)
  h = jax.nn.silu(h)
  h = _conv_ref(h, raw["w2"], raw["b2"], groups)
  if skip_mode == "identity":
    s = x
  else:
    s = _conv_ref(x, raw["ws"], raw["bs"], groups)
  return s + h


# ----------------------------------------------------------------------------
if __name__ == "__main__":
  # Small shapes consistent with the module: channels divisible by groups=3.
  N, C, H, W = 2, 6, 16, 16
  groups = 3

  key = jax.random.PRNGKey(0)
  kx, kw = jax.random.split(key)
  x = jax.random.normal(kx, (N, C, H, W), jnp.float32)

  # --- Config 1: identity skip (out_channels == channels), exact f32 MXU path.
  raw, kp, skip_mode = init_params(kw, C, None, False, groups, H, W)
  Co = C
  run_f32 = build_resblock_gc(N, C, Co, groups, H, W, skip_mode)
  out = jax.block_until_ready(run_f32(x, kp))
  ref = resblock_gc_reference(x, raw, groups, skip_mode)
  assert out.shape == (N, Co, H, W), out.shape
  err = float(jnp.max(jnp.abs(out - ref)))
  assert err < 1e-3, f"f32 path max abs error vs reference: {err}"

  # --- Config 2: same block, fast path — bf16 MXU operands (f32 accumulation)
  #     and approx-EUP sigmoid.  Loose sanity tolerance (bf16 rounding).
  run_bf16 = build_resblock_gc(N, C, Co, groups, H, W, skip_mode,
                               mxu_dtype=jnp.bfloat16, approx_silu=True)
  out_b = jax.block_until_ready(run_bf16(x, kp))
  err_b = float(jnp.max(jnp.abs(out_b - ref)))
  assert err_b < 2e-1, f"bf16 fast path max abs error vs reference: {err_b}"

  # --- Config 3: channel-changing block (out_channels=3) -> grouped 1x1 skip.
  Co2 = 3
  raw2, kp2, skip_mode2 = init_params(kw, C, Co2, False, groups, H, W)
  run_skip = build_resblock_gc(N, C, Co2, groups, H, W, skip_mode2)
  out2 = jax.block_until_ready(run_skip(x, kp2))
  ref2 = resblock_gc_reference(x, raw2, groups, skip_mode2)
  assert out2.shape == (N, Co2, H, W), out2.shape
  err2 = float(jnp.max(jnp.abs(out2 - ref2)))
  assert err2 < 1e-3, f"conv1x1-skip path max abs error vs reference: {err2}"

  print("KERNEL_OK")
</pallas_src>

<mosaic_0001>
module attributes {stable_mosaic.version = 11 : i64} {
  func.func @kernel(%arg0: i32, %arg1: memref<1x6x256xf32, #tpu.memory_space<vmem>>, %arg2: memref<6x1xf32, #tpu.memory_space<vmem>>, %arg3: memref<6x1xf32, #tpu.memory_space<vmem>>, %arg4: memref<6x6xf32, #tpu.memory_space<vmem>>, %arg5: memref<216x6xf32, #tpu.memory_space<vmem>>, %arg6: memref<18x1xf32, #tpu.memory_space<vmem>>, %arg7: memref<18x1xf32, #tpu.memory_space<vmem>>, %arg8: memref<18x1xf32, #tpu.memory_space<vmem>>, %arg9: memref<18x18xf32, #tpu.memory_space<vmem>>, %arg10: memref<72x18xf32, #tpu.memory_space<vmem>>, %arg11: memref<6x1xf32, #tpu.memory_space<vmem>>, %arg12: memref<9x1x256xf32, #tpu.memory_space<vmem>>, %arg13: memref<1x6x256xf32, #tpu.memory_space<vmem>>) attributes {dimension_semantics = [#tpu.dimension_semantics<parallel>], iteration_bounds = array<i64: 2>, scalar_prefetch = 0 : i64, scratch_operands = 0 : i64, tpu.core_type = #tpu.core_type<tc>, window_params = [{transform_indices = @transform_0, window_bounds = array<i64: 1, 6, 256>}, {pipeline_mode = #tpu.pipeline_mode<synchronous>, transform_indices = @transform_1, window_bounds = array<i64: 6, 1>}, {pipeline_mode = #tpu.pipeline_mode<synchronous>, transform_indices = @transform_2, window_bounds = array<i64: 6, 1>}, {pipeline_mode = #tpu.pipeline_mode<synchronous>, transform_indices = @transform_3, window_bounds = array<i64: 6, 6>}, {pipeline_mode = #tpu.pipeline_mode<synchronous>, transform_indices = @transform_4, window_bounds = array<i64: 216, 6>}, {pipeline_mode = #tpu.pipeline_mode<synchronous>, transform_indices = @transform_5, window_bounds = array<i64: 18, 1>}, {pipeline_mode = #tpu.pipeline_mode<synchronous>, transform_indices = @transform_6, window_bounds = array<i64: 18, 1>}, {pipeline_mode = #tpu.pipeline_mode<synchronous>, transform_indices = @transform_7, window_bounds = array<i64: 18, 1>}, {pipeline_mode = #tpu.pipeline_mode<synchronous>, transform_indices = @transform_8, window_bounds = array<i64: 18, 18>}, {pipeline_mode = #tpu.pipeline_mode<synchronous>, transform_indices = @transform_9, window_bounds = array<i64: 72, 18>}, {pipeline_mode = #tpu.pipeline_mode<synchronous>, transform_indices = @transform_10, window_bounds = array<i64: 6, 1>}, {pipeline_mode = #tpu.pipeline_mode<synchronous>, transform_indices = @transform_11, window_bounds = array<i64: 9, 1, 256>}, {transform_indices = @transform_12, window_bounds = array<i64: 1, 6, 256>}]} {
    %c0 = arith.constant 0 : index
    %c0_0 = arith.constant 0 : index
    %0 = vector.load %arg2[%c0, %c0_0] : memref<6x1xf32, #tpu.memory_space<vmem>>, vector<6x1xf32>
    %c0_1 = arith.constant 0 : index
    %c0_2 = arith.constant 0 : index
    %1 = vector.load %arg3[%c0_1, %c0_2] : memref<6x1xf32, #tpu.memory_space<vmem>>, vector<6x1xf32>
    %c0_3 = arith.constant 0 : index
    %c0_4 = arith.constant 0 : index
    %2 = vector.load %arg4[%c0_3, %c0_4] : memref<6x6xf32, #tpu.memory_space<vmem>>, vector<6x6xf32>
    %c0_5 = arith.constant 0 : index
    %c0_6 = arith.constant 0 : index
    %3 = vector.load %arg7[%c0_5, %c0_6] : memref<18x1xf32, #tpu.memory_space<vmem>>, vector<18x1xf32>
    %c0_7 = arith.constant 0 : index
    %c0_8 = arith.constant 0 : index
    %4 = vector.load %arg8[%c0_7, %c0_8] : memref<18x1xf32, #tpu.memory_space<vmem>>, vector<18x1xf32>
    %c0_9 = arith.constant 0 : index
    %c0_10 = arith.constant 0 : index
    %5 = vector.load %arg9[%c0_9, %c0_10] : memref<18x18xf32, #tpu.memory_space<vmem>>, vector<18x18xf32>
    %c0_11 = arith.constant 0 : index
    %c0_12 = arith.constant 0 : index
    %6 = vector.load %arg5[%c0_11, %c0_12] : memref<216x6xf32, #tpu.memory_space<vmem>>, vector<216x6xf32>
    %c0_13 = arith.constant 0 : index
    %c0_14 = arith.constant 0 : index
    %7 = vector.load %arg6[%c0_13, %c0_14] : memref<18x1xf32, #tpu.memory_space<vmem>>, vector<18x1xf32>
    %c0_15 = arith.constant 0 : index
    %c0_16 = arith.constant 0 : index
    %8 = vector.load %arg10[%c0_15, %c0_16] : memref<72x18xf32, #tpu.memory_space<vmem>>, vector<72x18xf32>
    %c0_17 = arith.constant 0 : index
    %c0_18 = arith.constant 0 : index
    %9 = vector.load %arg11[%c0_17, %c0_18] : memref<6x1xf32, #tpu.memory_space<vmem>>, vector<6x1xf32>
    %c0_19 = arith.constant 0 : index
    %c0_20 = arith.constant 0 : index
    %c0_21 = arith.constant 0 : index
    %10 = vector.load %arg12[%c0_19, %c0_20, %c0_21] : memref<9x1x256xf32, #tpu.memory_space<vmem>>, vector<1x1x256xf32>
    %11 = vector.shape_cast %10 : vector<1x1x256xf32> to vector<1x256xf32>
    %c1 = arith.constant 1 : index
    %c0_22 = arith.constant 0 : index
    %c0_23 = arith.constant 0 : index
    %12 = vector.load %arg12[%c1, %c0_22, %c0_23] : memref<9x1x256xf32, #tpu.memory_space<vmem>>, vector<1x1x256xf32>
    %13 = vector.shape_cast %12 : vector<1x1x256xf32> to vector<1x256xf32>
    %c2 = arith.constant 2 : index
    %c0_24 = arith.constant 0 : index
    %c0_25 = arith.constant 0 : index
    %14 = vector.load %arg12[%c2, %c0_24, %c0_25] : memref<9x1x256xf32, #tpu.memory_space<vmem>>, vector<1x1x256xf32>
    %15 = vector.shape_cast %14 : vector<1x1x256xf32> to vector<1x256xf32>
    %c3 = arith.constant 3 : index
    %c0_26 = arith.constant 0 : index
    %c0_27 = arith.constant 0 : index
    %16 = vector.load %arg12[%c3, %c0_26, %c0_27] : memref<9x1x256xf32, #tpu.memory_space<vmem>>, vector<1x1x256xf32>
    %17 = vector.shape_cast %16 : vector<1x1x256xf32> to vector<1x256xf32>
    %c5 = arith.constant 5 : index
    %c0_28 = arith.constant 0 : index
    %c0_29 = arith.constant 0 : index
    %18 = vector.load %arg12[%c5, %c0_28, %c0_29] : memref<9x1x256xf32, #tpu.memory_space<vmem>>, vector<1x1x256xf32>
    %19 = vector.shape_cast %18 : vector<1x1x256xf32> to vector<1x256xf32>
    %c6 = arith.constant 6 : index
    %c0_30 = arith.constant 0 : index
    %c0_31 = arith.constant 0 : index
    %20 = vector.load %arg12[%c6, %c0_30, %c0_31] : memref<9x1x256xf32, #tpu.memory_space<vmem>>, vector<1x1x256xf32>
    %21 = vector.shape_cast %20 : vector<1x1x256xf32> to vector<1x256xf32>
    %c7 = arith.constant 7 : index
    %c0_32 = arith.constant 0 : index
    %c0_33 = arith.constant 0 : index
    %22 = vector.load %arg12[%c7, %c0_32, %c0_33] : memref<9x1x256xf32, #tpu.memory_space<vmem>>, vector<1x1x256xf32>
    %23 = vector.shape_cast %22 : vector<1x1x256xf32> to vector<1x256xf32>
    %c8 = arith.constant 8 : index
    %c0_34 = arith.constant 0 : index
    %c0_35 = arith.constant 0 : index
    %24 = vector.load %arg12[%c8, %c0_34, %c0_35] : memref<9x1x256xf32, #tpu.memory_space<vmem>>, vector<1x1x256xf32>
    %25 = vector.shape_cast %24 : vector<1x1x256xf32> to vector<1x256xf32>
    %c0_36 = arith.constant 0 : index
    %c0_37 = arith.constant 0 : index
    %c0_38 = arith.constant 0 : index
    %26 = vector.load %arg1[%c0_36, %c0_37, %c0_38] : memref<1x6x256xf32, #tpu.memory_space<vmem>>, vector<1x6x256xf32>
    %27 = vector.shape_cast %26 : vector<1x6x256xf32> to vector<6x256xf32>
    %cst = arith.constant dense<0.000000e+00> : vector<6xf32>
    %28 = vector.multi_reduction <add>, %27, %cst [1] : vector<6x256xf32> to vector<6xf32>
    %29 = vector.shape_cast %28 : vector<6xf32> to vector<6x1xf32>
    %cst_39 = arith.constant dense<0.000000e+00> : vector<6x1xf32>
    %30 = tpu.matmul %2, %29, %cst_39 {dimension_numbers = #tpu.dot_dimension_numbers<[1], [0], [0], [1], [0, 0, 1, 1], [], []>} : vector<6x6xf32>, vector<6x1xf32>, vector<6x1xf32> -> vector<6x1xf32>
    %31 = vector.broadcast %30 : vector<6x1xf32> to vector<6x256xf32>
    %32 = arith.subf %27, %31 : vector<6x256xf32>
    %33 = arith.mulf %32, %32 : vector<6x256xf32>
    %cst_40 = arith.constant dense<0.000000e+00> : vector<6xf32>
    %34 = vector.multi_reduction <add>, %33, %cst_40 [1] : vector<6x256xf32> to vector<6xf32>
    %35 = vector.shape_cast %34 : vector<6xf32> to vector<6x1xf32>
    %cst_41 = arith.constant dense<0.000000e+00> : vector<6x1xf32>
    %36 = tpu.matmul %2, %35, %cst_41 {dimension_numbers = #tpu.dot_dimension_numbers<[1], [0], [0], [1], [0, 0, 1, 1], [], []>} : vector<6x6xf32>, vector<6x1xf32>, vector<6x1xf32> -> vector<6x1xf32>
    %cst_42 = arith.constant 9.99999974E-6 : f32
    %37 = vector.broadcast %cst_42 : f32 to vector<6x1xf32>
    %38 = arith.addf %36, %37 : vector<6x1xf32>
    %39 = math.rsqrt %38 : vector<6x1xf32>
    %40 = arith.mulf %39, %0 : vector<6x1xf32>
    %41 = vector.broadcast %40 : vector<6x1xf32> to vector<6x256xf32>
    %42 = arith.mulf %32, %41 : vector<6x256xf32>
    %43 = vector.broadcast %1 : vector<6x1xf32> to vector<6x256xf32>
    %44 = arith.addf %42, %43 : vector<6x256xf32>
    %cst_43 = arith.constant 0.000000e+00 : f32
    %45 = vector.broadcast %cst_43 : f32 to vector<6x256xf32>
    %46 = arith.subf %45, %44 : vector<6x256xf32>
    %47 = math.exp %46 : vector<6x256xf32>
    %cst_44 = arith.constant 1.000000e+00 : f32
    %48 = vector.broadcast %cst_44 : f32 to vector<6x256xf32>
    %49 = arith.addf %48, %47 : vector<6x256xf32>
    %50 = tpu.reciprocal %49 : vector<6x256xf32> -> vector<6x256xf32>
    %51 = arith.mulf %44, %50 : vector<6x256xf32>
    %cst_45 = arith.constant dense<0.000000e+00> : vector<216x256xf32>
    %52 = tpu.matmul %6, %51, %cst_45 {dimension_numbers = #tpu.dot_dimension_numbers<[1], [0], [0], [1], [0, 0, 1, 1], [], []>} : vector<216x6xf32>, vector<6x256xf32>, vector<216x256xf32> -> vector<216x256xf32>
    %cst_46 = arith.constant 0.000000e+00 : f32
    %53 = vector.broadcast %cst_46 : f32 to vector<24x256xf32>
    %54 = vector.extract_strided_slice %52 {offsets = [0, 0], sizes = [24, 256], strides = [1, 1]} : vector<216x256xf32> to vector<24x256xf32>
    %c17_i32 = arith.constant 17 : i32
    %55 = tpu.dynamic_rotate %54 by %c17_i32 dim 1 : vector<24x256xf32>, i32 -> vector<24x256xf32>
    %56 = vector.broadcast %11 : vector<1x256xf32> to vector<24x256xf32>
    %57 = arith.mulf %55, %56 : vector<24x256xf32>
    %58 = arith.addf %53, %57 : vector<24x256xf32>
    %59 = vector.extract_strided_slice %52 {offsets = [24, 0], sizes = [24, 256], strides = [1, 1]} : vector<216x256xf32> to vector<24x256xf32>
    %c16_i32 = arith.constant 16 : i32
    %60 = tpu.dynamic_rotate %59 by %c16_i32 dim 1 : vector<24x256xf32>, i32 -> vector<24x256xf32>
    %61 = vector.broadcast %13 : vector<1x256xf32> to vector<24x256xf32>
    %62 = arith.mulf %60, %61 : vector<24x256xf32>
    %63 = arith.addf %58, %62 : vector<24x256xf32>
    %64 = vector.extract_strided_slice %52 {offsets = [48, 0], sizes = [24, 256], strides = [1, 1]} : vector<216x256xf32> to vector<24x256xf32>
    %c15_i32 = arith.constant 15 : i32
    %65 = tpu.dynamic_rotate %64 by %c15_i32 dim 1 : vector<24x256xf32>, i32 -> vector<24x256xf32>
    %66 = vector.broadcast %15 : vector<1x256xf32> to vector<24x256xf32>
    %67 = arith.mulf %65, %66 : vector<24x256xf32>
    %68 = arith.addf %63, %67 : vector<24x256xf32>
    %69 = vector.extract_strided_slice %52 {offsets = [72, 0], sizes = [24, 256], strides = [1, 1]} : vector<216x256xf32> to vector<24x256xf32>
    %c1_i32 = arith.constant 1 : i32
    %70 = tpu.dynamic_rotate %69 by %c1_i32 dim 1 : vector<24x256xf32>, i32 -> vector<24x256xf32>
    %71 = vector.broadcast %17 : vector<1x256xf32> to vector<24x256xf32>
    %72 = arith.mulf %70, %71 : vector<24x256xf32>
    %73 = arith.addf %68, %72 : vector<24x256xf32>
    %74 = vector.extract_strided_slice %52 {offsets = [96, 0], sizes = [24, 256], strides = [1, 1]} : vector<216x256xf32> to vector<24x256xf32>
    %75 = arith.addf %73, %74 : vector<24x256xf32>
    %76 = vector.extract_strided_slice %52 {offsets = [120, 0], sizes = [24, 256], strides = [1, 1]} : vector<216x256xf32> to vector<24x256xf32>
    %c255_i32 = arith.constant 255 : i32
    %77 = tpu.dynamic_rotate %76 by %c255_i32 dim 1 : vector<24x256xf32>, i32 -> vector<24x256xf32>
    %78 = vector.broadcast %19 : vector<1x256xf32> to vector<24x256xf32>
    %79 = arith.mulf %77, %78 : vector<24x256xf32>
    %80 = arith.addf %75, %79 : vector<24x256xf32>
    %81 = vector.extract_strided_slice %52 {offsets = [144, 0], sizes = [24, 256], strides = [1, 1]} : vector<216x256xf32> to vector<24x256xf32>
    %c241_i32 = arith.constant 241 : i32
    %82 = tpu.dynamic_rotate %81 by %c241_i32 dim 1 : vector<24x256xf32>, i32 -> vector<24x256xf32>
    %83 = vector.broadcast %21 : vector<1x256xf32> to vector<24x256xf32>
    %84 = arith.mulf %82, %83 : vector<24x256xf32>
    %85 = arith.addf %80, %84 : vector<24x256xf32>
    %86 = vector.extract_strided_slice %52 {offsets = [168, 0], sizes = [24, 256], strides = [1, 1]} : vector<216x256xf32> to vector<24x256xf32>
    %c240_i32 = arith.constant 240 : i32
    %87 = tpu.dynamic_rotate %86 by %c240_i32 dim 1 : vector<24x256xf32>, i32 -> vector<24x256xf32>
    %88 = vector.broadcast %23 : vector<1x256xf32> to vector<24x256xf32>
    %89 = arith.mulf %87, %88 : vector<24x256xf32>
    %90 = arith.addf %85, %89 : vector<24x256xf32>
    %91 = vector.extract_strided_slice %52 {offsets = [192, 0], sizes = [24, 256], strides = [1, 1]} : vector<216x256xf32> to vector<24x256xf32>
    %c239_i32 = arith.constant 239 : i32
    %92 = tpu.dynamic_rotate %91 by %c239_i32 dim 1 : vector<24x256xf32>, i32 -> vector<24x256xf32>
    %93 = vector.broadcast %25 : vector<1x256xf32> to vector<24x256xf32>
    %94 = arith.mulf %92, %93 : vector<24x256xf32>
    %95 = arith.addf %90, %94 : vector<24x256xf32>
    %96 = vector.extract_strided_slice %95 {offsets = [0, 0], sizes = [18, 256], strides = [1, 1]} : vector<24x256xf32> to vector<18x256xf32>
    %97 = vector.broadcast %7 : vector<18x1xf32> to vector<18x256xf32>
    %98 = arith.addf %96, %97 : vector<18x256xf32>
    %cst_47 = arith.constant dense<0.000000e+00> : vector<18xf32>
    %99 = vector.multi_reduction <add>, %98, %cst_47 [1] : vector<18x256xf32> to vector<18xf32>
    %100 = vector.shape_cast %99 : vector<18xf32> to vector<18x1xf32>
    %cst_48 = arith.constant dense<0.000000e+00> : vector<18x1xf32>
    %101 = tpu.matmul %5, %100, %cst_48 {dimension_numbers = #tpu.dot_dimension_numbers<[1], [0], [0], [1], [0, 0, 1, 1], [], []>} : vector<18x18xf32>, vector<18x1xf32>, vector<18x1xf32> -> vector<18x1xf32>
    %102 = vector.broadcast %101 : vector<18x1xf32> to vector<18x256xf32>
    %103 = arith.subf %98, %102 : vector<18x256xf32>
    %104 = arith.mulf %103, %103 : vector<18x256xf32>
    %cst_49 = arith.constant dense<0.000000e+00> : vector<18xf32>
    %105 = vector.multi_reduction <add>, %104, %cst_49 [1] : vector<18x256xf32> to vector<18xf32>
    %106 = vector.shape_cast %105 : vector<18xf32> to vector<18x1xf32>
    %cst_50 = arith.constant dense<0.000000e+00> : vector<18x1xf32>
    %107 = tpu.matmul %5, %106, %cst_50 {dimension_numbers = #tpu.dot_dimension_numbers<[1], [0], [0], [1], [0, 0, 1, 1], [], []>} : vector<18x18xf32>, vector<18x1xf32>, vector<18x1xf32> -> vector<18x1xf32>
    %cst_51 = arith.constant 9.99999974E-6 : f32
    %108 = vector.broadcast %cst_51 : f32 to vector<18x1xf32>
    %109 = arith.addf %107, %108 : vector<18x1xf32>
    %110 = math.rsqrt %109 : vector<18x1xf32>
    %111 = arith.mulf %110, %3 : vector<18x1xf32>
    %112 = vector.broadcast %111 : vector<18x1xf32> to vector<18x256xf32>
    %113 = arith.mulf %103, %112 : vector<18x256xf32>
    %114 = vector.broadcast %4 : vector<18x1xf32> to vector<18x256xf32>
    %115 = arith.addf %113, %114 : vector<18x256xf32>
    %cst_52 = arith.constant 0.000000e+00 : f32
    %116 = vector.broadcast %cst_52 : f32 to vector<18x256xf32>
    %117 = arith.subf %116, %115 : vector<18x256xf32>
    %118 = math.exp %117 : vector<18x256xf32>
    %cst_53 = arith.constant 1.000000e+00 : f32
    %119 = vector.broadcast %cst_53 : f32 to vector<18x256xf32>
    %120 = arith.addf %119, %118 : vector<18x256xf32>
    %121 = tpu.reciprocal %120 : vector<18x256xf32> -> vector<18x256xf32>
    %122 = arith.mulf %115, %121 : vector<18x256xf32>
    %cst_54 = arith.constant dense<0.000000e+00> : vector<72x256xf32>
    %123 = tpu.matmul %8, %122, %cst_54 {dimension_numbers = #tpu.dot_dimension_numbers<[1], [0], [0], [1], [0, 0, 1, 1], [], []>} : vector<72x18xf32>, vector<18x256xf32>, vector<72x256xf32> -> vector<72x256xf32>
    %cst_55 = arith.constant 0.000000e+00 : f32
    %124 = vector.broadcast %cst_55 : f32 to vector<8x256xf32>
    %125 = vector.extract_strided_slice %123 {offsets = [0, 0], sizes = [8, 256], strides = [1, 1]} : vector<72x256xf32> to vector<8x256xf32>
    %c17_i32_56 = arith.constant 17 : i32
    %126 = tpu.dynamic_rotate %125 by %c17_i32_56 dim 1 : vector<8x256xf32>, i32 -> vector<8x256xf32>
    %127 = vector.broadcast %11 : vector<1x256xf32> to vector<8x256xf32>
    %128 = arith.mulf %126, %127 : vector<8x256xf32>
    %129 = arith.addf %124, %128 : vector<8x256xf32>
    %130 = vector.extract_strided_slice %123 {offsets = [8, 0], sizes = [8, 256], strides = [1, 1]} : vector<72x256xf32> to vector<8x256xf32>
    %c16_i32_57 = arith.constant 16 : i32
    %131 = tpu.dynamic_rotate %130 by %c16_i32_57 dim 1 : vector<8x256xf32>, i32 -> vector<8x256xf32>
    %132 = vector.broadcast %13 : vector<1x256xf32> to vector<8x256xf32>
    %133 = arith.mulf %131, %132 : vector<8x256xf32>
    %134 = arith.addf %129, %133 : vector<8x256xf32>
    %135 = vector.extract_strided_slice %123 {offsets = [16, 0], sizes = [8, 256], strides = [1, 1]} : vector<72x256xf32> to vector<8x256xf32>
    %c15_i32_58 = arith.constant 15 : i32
    %136 = tpu.dynamic_rotate %135 by %c15_i32_58 dim 1 : vector<8x256xf32>, i32 -> vector<8x256xf32>
    %137 = vector.broadcast %15 : vector<1x256xf32> to vector<8x256xf32>
    %138 = arith.mulf %136, %137 : vector<8x256xf32>
    %139 = arith.addf %134, %138 : vector<8x256xf32>
    %140 = vector.extract_strided_slice %123 {offsets = [24, 0], sizes = [8, 256], strides = [1, 1]} : vector<72x256xf32> to vector<8x256xf32>
    %c1_i32_59 = arith.constant 1 : i32
    %141 = tpu.dynamic_rotate %140 by %c1_i32_59 dim 1 : vector<8x256xf32>, i32 -> vector<8x256xf32>
    %142 = vector.broadcast %17 : vector<1x256xf32> to vector<8x256xf32>
    %143 = arith.mulf %141, %142 : vector<8x256xf32>
    %144 = arith.addf %139, %143 : vector<8x256xf32>
    %145 = vector.extract_strided_slice %123 {offsets = [32, 0], sizes = [8, 256], strides = [1, 1]} : vector<72x256xf32> to vector<8x256xf32>
    %146 = arith.addf %144, %145 : vector<8x256xf32>
    %147 = vector.extract_strided_slice %123 {offsets = [40, 0], sizes = [8, 256], strides = [1, 1]} : vector<72x256xf32> to vector<8x256xf32>
    %c255_i32_60 = arith.constant 255 : i32
    %148 = tpu.dynamic_rotate %147 by %c255_i32_60 dim 1 : vector<8x256xf32>, i32 -> vector<8x256xf32>
    %149 = vector.broadcast %19 : vector<1x256xf32> to vector<8x256xf32>
    %150 = arith.mulf %148, %149 : vector<8x256xf32>
    %151 = arith.addf %146, %150 : vector<8x256xf32>
    %152 = vector.extract_strided_slice %123 {offsets = [48, 0], sizes = [8, 256], strides = [1, 1]} : vector<72x256xf32> to vector<8x256xf32>
    %c241_i32_61 = arith.constant 241 : i32
    %153 = tpu.dynamic_rotate %152 by %c241_i32_61 dim 1 : vector<8x256xf32>, i32 -> vector<8x256xf32>
    %154 = vector.broadcast %21 : vector<1x256xf32> to vector<8x256xf32>
    %155 = arith.mulf %153, %154 : vector<8x256xf32>
    %156 = arith.addf %151, %155 : vector<8x256xf32>
    %157 = vector.extract_strided_slice %123 {offsets = [56, 0], sizes = [8, 256], strides = [1, 1]} : vector<72x256xf32> to vector<8x256xf32>
    %c240_i32_62 = arith.constant 240 : i32
    %158 = tpu.dynamic_rotate %157 by %c240_i32_62 dim 1 : vector<8x256xf32>, i32 -> vector<8x256xf32>
    %159 = vector.broadcast %23 : vector<1x256xf32> to vector<8x256xf32>
    %160 = arith.mulf %158, %159 : vector<8x256xf32>
    %161 = arith.addf %156, %160 : vector<8x256xf32>
    %162 = vector.extract_strided_slice %123 {offsets = [64, 0], sizes = [8, 256], strides = [1, 1]} : vector<72x256xf32> to vector<8x256xf32>
    %c239_i32_63 = arith.constant 239 : i32
    %163 = tpu.dynamic_rotate %162 by %c239_i32_63 dim 1 : vector<8x256xf32>, i32 -> vector<8x256xf32>
    %164 = vector.broadcast %25 : vector<1x256xf32> to vector<8x256xf32>
    %165 = arith.mulf %163, %164 : vector<8x256xf32>
    %166 = arith.addf %161, %165 : vector<8x256xf32>
    %167 = vector.extract_strided_slice %166 {offsets = [0, 0], sizes = [6, 256], strides = [1, 1]} : vector<8x256xf32> to vector<6x256xf32>
    %168 = vector.broadcast %9 : vector<6x1xf32> to vector<6x256xf32>
    %169 = arith.addf %167, %168 : vector<6x256xf32>
    %170 = arith.addf %27, %169 : vector<6x256xf32>
    %c0_64 = arith.constant 0 : index
    %c0_65 = arith.constant 0 : index
    %c0_66 = arith.constant 0 : index
    %171 = vector.load %arg13[%c0_64, %c0_65, %c0_66] : memref<1x6x256xf32, #tpu.memory_space<vmem>>, vector<1x6x256xf32>
    %172 = vector.shape_cast %171 : vector<1x6x256xf32> to vector<6x256xf32>
    %173 = vector.shape_cast %170 : vector<6x256xf32> to vector<1x6x256xf32>
    tpu.vector_store %arg13[%c0_64, %c0_65, %c0_66], %173 {strides = array<i32>} : memref<1x6x256xf32, #tpu.memory_space<vmem>>, vector<1x6x256xf32>,
    return
  }
  func.func @transform_0(%arg0: i32) -> (i32, i32, i32) {
    %c0_i32 = arith.constant 0 : i32
    %c0_i32_0 = arith.constant 0 : i32
    %c0_i32_1 = arith.constant 0 : i32
    return %arg0, %c0_i32, %c0_i32_0 : i32, i32, i32
  }
  func.func @transform_1(%arg0: i32) -> (i32, i32) {
    %c0_i32 = arith.constant 0 : i32
    %c0_i32_0 = arith.constant 0 : i32
    %c0_i32_1 = arith.constant 0 : i32
    return %c0_i32, %c0_i32_0 : i32, i32
  }
  func.func @transform_2(%arg0: i32) -> (i32, i32) {
    %c0_i32 = arith.constant 0 : i32
    %c0_i32_0 = arith.constant 0 : i32
    %c0_i32_1 = arith.constant 0 : i32
    return %c0_i32, %c0_i32_0 : i32, i32
  }
  func.func @transform_3(%arg0: i32) -> (i32, i32) {
    %c0_i32 = arith.constant 0 : i32
    %c0_i32_0 = arith.constant 0 : i32
    %c0_i32_1 = arith.constant 0 : i32
    return %c0_i32, %c0_i32_0 : i32, i32
  }
  func.func @transform_4(%arg0: i32) -> (i32, i32) {
    %c0_i32 = arith.constant 0 : i32
    %c0_i32_0 = arith.constant 0 : i32
    %c0_i32_1 = arith.constant 0 : i32
    return %c0_i32, %c0_i32_0 : i32, i32
  }
  func.func @transform_5(%arg0: i32) -> (i32, i32) {
    %c0_i32 = arith.constant 0 : i32
    %c0_i32_0 = arith.constant 0 : i32
    %c0_i32_1 = arith.constant 0 : i32
    return %c0_i32, %c0_i32_0 : i32, i32
  }
  func.func @transform_6(%arg0: i32) -> (i32, i32) {
    %c0_i32 = arith.constant 0 : i32
    %c0_i32_0 = arith.constant 0 : i32
    %c0_i32_1 = arith.constant 0 : i32
    return %c0_i32, %c0_i32_0 : i32, i32
  }
  func.func @transform_7(%arg0: i32) -> (i32, i32) {
    %c0_i32 = arith.constant 0 : i32
    %c0_i32_0 = arith.constant 0 : i32
    %c0_i32_1 = arith.constant 0 : i32
    return %c0_i32, %c0_i32_0 : i32, i32
  }
  func.func @transform_8(%arg0: i32) -> (i32, i32) {
    %c0_i32 = arith.constant 0 : i32
    %c0_i32_0 = arith.constant 0 : i32
    %c0_i32_1 = arith.constant 0 : i32
    return %c0_i32, %c0_i32_0 : i32, i32
  }
  func.func @transform_9(%arg0: i32) -> (i32, i32) {
    %c0_i32 = arith.constant 0 : i32
    %c0_i32_0 = arith.constant 0 : i32
    %c0_i32_1 = arith.constant 0 : i32
    return %c0_i32, %c0_i32_0 : i32, i32
  }
  func.func @transform_10(%arg0: i32) -> (i32, i32) {
    %c0_i32 = arith.constant 0 : i32
    %c0_i32_0 = arith.constant 0 : i32
    %c0_i32_1 = arith.constant 0 : i32
    return %c0_i32, %c0_i32_0 : i32, i32
  }
  func.func @transform_11(%arg0: i32) -> (i32, i32, i32) {
    %c0_i32 = arith.constant 0 : i32
    %c0_i32_0 = arith.constant 0 : i32
    %c0_i32_1 = arith.constant 0 : i32
    %c0_i32_2 = arith.constant 0 : i32
    return %c0_i32, %c0_i32_0, %c0_i32_1 : i32, i32, i32
  }
  func.func @transform_12(%arg0: i32) -> (i32, i32, i32) {
    %c0_i32 = arith.constant 0 : i32
    %c0_i32_0 = arith.constant 0 : i32
    %c0_i32_1 = arith.constant 0 : i32
    return %arg0, %c0_i32, %c0_i32_0 : i32, i32, i32
  }
}

</mosaic_0001>

<bundles_post_ra>
// kernel: tpu_custom_call.1
= control target key start
LH: loop header
LB: loop body
LE: loop exit
PB: predicated region body
PF: predicated region fallthrough
CT: control target
= control target key end

     0   :  { %s2259_s21 = smov 0   ;;  %s3036_s0 = inlined_call_operand.vmem [shape: f32[2,6,256], index: 0, kind: input, shape index: {}]   ;;  %s3037_s1 = inlined_call_operand.vmem [shape: f32[6,1], index: 1, kind: input, shape index: {}]   ;;  %s3038_s2 = inlined_call_operand.vmem [shape: f32[6,1], index: 2, kind: input, shape index: {}]   ;;  %s3039_s3 = inlined_call_operand.vmem [shape: f32[6,6], index: 3, kind: input, shape index: {}]   ;;  %s3040_s4 = inlined_call_operand.vmem [shape: f32[216,6], index: 4, kind: input, shape index: {}]   ;;  %s3041_s5 = inlined_call_operand.vmem [shape: f32[18,1], index: 5, kind: input, shape index: {}]   ;;  %s3042_s6 = inlined_call_operand.vmem [shape: f32[18,1], index: 6, kind: input, shape index: {}]   ;;  %s3043_s7 = inlined_call_operand.vmem [shape: f32[18,1], index: 7, kind: input, shape index: {}]   ;;  %s3044_s8 = inlined_call_operand.vmem [shape: f32[18,18], index: 8, kind: input, shape index: {}]   ;;  %s3045_s9 = inlined_call_operand.vmem [shape: f32[72,18], index: 9, kind: input, shape index: {}]   ;;  %s3046_s10 = inlined_call_operand.vmem [shape: f32[6,1], index: 10, kind: input, shape index: {}]   ;;  %s3047_s11 = inlined_call_operand.vmem [shape: f32[9,1,256], index: 11, kind: input, shape index: {}]   ;;  %s3048_s12 = inlined_call_operand.vmem [shape: f32[2,6,256], index: 12, kind: output, shape index: {}]  }
   0x1 LB: > { %s1970_s22 = sadd.s32 4294967295, %s2180_s21   ;;  %p1974_p0 = scmp.ge.s32.totalorder %s2180_s21, 1  ;;  %s2180_s21 = sphi %s2259_s21, %s22_s21  }
   0x2   : > { %p362_p1 = scmp.lt.s32.totalorder %s2180_s21, 3 }
   0x4   : > { %p363_p2 = pnand %p1974_p0, %p362_p1 }
   0x5   : > { %p404_p3 = scmp.lt.s32.totalorder (!%p363_p2), %s1970_s22, 1  ;;  %v2182_v0 = vmov (!%p363_p2), 0.0   ;;  %vm483_vm0 = vcmask (!%p363_p2), 1045504   ;;  %vm2183_vm1 = vmmov (!%p363_p2), 0   ;;  %v2184_v6 = vmov (!%p363_p2), 0   ;;  %v453_v11 = vld [vmem:[%s3041_s5] sm:$0xff] (!%p363_p2) }
   0x6   : > { %366 = sbr.rel (%p363_p2) target bundleno = 2904 (0xb58), region = 68  ;;  %2058 = vmatprep.subr.mxu0 (!%p363_p2), %v2182_v0  ;;  %2063 = vmatprep.subr.mxu1 (!%p363_p2), %v2182_v0  ;;  %v416_v7 = vld [vmem:[%s3039_s3] sm:$0x3f] (!%p363_p2)  ;;  %vm489_vm2 = vcmask (!%p363_p2), 48128   ;;  %v454_v28 = vld [vmem:[%s3041_s5 + $0x8] sm:$0xff] (!%p363_p2)  ;;  %v448_v50 = vld [vmem:[%s3040_s4 + $0xb0] sm:$0xff] (!%p363_p2) }
   0x7   : > { %2060 = vmatprep.mubr.msk.f32.mxu0 (!%p363_p2), %vm2183_vm1, %v2182_v0  ;;  %2065 = vmatprep.mubr.msk.f32.mxu1 (!%p363_p2), %vm2183_vm1, %v2182_v0  ;;  %v414_v24 = vld [vmem:[%s3037_s1] sm:$0x3f] (!%p363_p2)  ;;  %v447_v48 = vld [vmem:[%s3040_s4 + $0xa8] sm:$0xff] (!%p363_p2)  ;;  %v428_v51 = vld [vmem:[%s3040_s4 + $0x10] sm:$0xff] (!%p363_p2)  ;;  %s2185_s17 = smov (!%p363_p2), 112   ;;  %s2186_s18 = smov (!%p363_p2), 17  }
   0x8   : > { %2130 = vset.pattern.permute.xlu0 (!%p363_p2), %v2184_v6  ;;  %2131 = vset.pattern.permute.xlu1 (!%p363_p2), %v2184_v6  ;;  %v415_v27 = vld [vmem:[%s3038_s2] sm:$0x3f] (!%p363_p2)  ;;  %v427_v49 = vld [vmem:[%s3040_s4 + $0x8] sm:$0xff] (!%p363_p2)  ;;  %v449_v52 = vld [vmem:[%s3040_s4 + $0xb8] sm:$0xff] (!%p363_p2)  ;;  %s3050_s19 = smov (!%p363_p2), 111   ;;  %s2188_s20 = smov (!%p363_p2), 16  }
   0x9   : > { %v426_v47 = vld [vmem:[%s3040_s4] sm:$0xff] (!%p363_p2)  ;;  %v429_v53 = vld [vmem:[%s3040_s4 + $0x18] sm:$0xff] (!%p363_p2)  ;;  %v451_v56 = vld [vmem:[%s3040_s4 + $0xc8] sm:$0xff] (!%p363_p2)  ;;  %s2189_s24 = smov (!%p363_p2), 15   ;;  %s2190_s25 = smov (!%p363_p2), 1   ;;  %vm1366_vm11 = vcmask (!%p363_p2), 1041408  }
   0xa   : > { %v450_v54 = vld [vmem:[%s3040_s4 + $0xc0] sm:$0xff] (!%p363_p2)  ;;  %v431_v57 = vld [vmem:[%s3040_s4 + $0x28] sm:$0xff] (!%p363_p2)  ;;  %v452_v58 = vld [vmem:[%s3040_s4 + $0xd0] sm:$0xff] (!%p363_p2)  ;;  %s2191_s27 = smov (!%p363_p2), 127   ;;  %s2192_s28 = smov (!%p363_p2), 113   ;;  %vm1372_vm12 = vcmask (!%p363_p2), 146432  }
   0xb   : > { %v430_v55 = vld [vmem:[%s3040_s4 + $0x20] sm:$0xff] (!%p363_p2)  ;;  %v432_v59 = vld [vmem:[%s3040_s4 + $0x30] sm:$0xff] (!%p363_p2)  ;;  %v433_v60 = vld [vmem:[%s3040_s4 + $0x38] sm:$0xff] (!%p363_p2) }
   0xc   : > { %v434_v61 = vld [vmem:[%s3040_s4 + $0x40] sm:$0xff] (!%p363_p2)  ;;  %v435_v62 = vld [vmem:[%s3040_s4 + $0x48] sm:$0xff] (!%p363_p2)  ;;  %v436_v63 = vld [vmem:[%s3040_s4 + $0x50] sm:$0xff] (!%p363_p2) }
   0xd   : > { %s3055_s22 = smov (!%p404_p3, %s1970_s22), 1  ;;  %v442_v6 = vld [vmem:[%s3040_s4 + $0x80] sm:$0xff] }
   0xe   : > { %s3049_s23 = sshll.u32 %s3055_s22, 4 }
   0xf   : > { %s2277_s26 = scalar_lea.vmem %s3036_s0, %s3049_s23 }
  0x10   : > { %v481_v1 = vld [vmem:[%s2277_s26] sm:$0x3f]  ;;  %v482_v2 = vld [vmem:[%s2277_s26 + $0x8] sm:$0x3f] }
  0x11   : > { %v484_v3 = vsel %vm483_vm0, %v481_v1, 0.0  ;;  %v485_v4 = vsel %vm483_vm0, %v482_v2, 0.0 }
  0x12   : > { %v486_v5 = vadd.f32 %v485_v4, %v484_v3  ;;  %v439_v3 = vld [vmem:[%s3040_s4 + $0x68] sm:$0xff]  ;;  %v440_v4 = vld [vmem:[%s3040_s4 + $0x70] sm:$0xff] }
  0x14   : > { %487 = vadd.xlane.f32.xlu0 %v486_v5  ;;  %v441_v5 = vld [vmem:[%s3040_s4 + $0x78] sm:$0xff] }
  0xa1   : > { %v488_v8 = vpop.xlane.xlu0 %487 }
  0xa2   : > { %2059 = vmatpush3.msk.msra.mxu0 %vm483_vm0, %v488_v8  ;;  %v444_v8 = vld [vmem:[%s3040_s4 + $0x90] sm:$0xff] }
  0xa3   : > { %2061 = vmatmul.mubr.msk.f32.vlgmr.msra.gmra.mrb[0].mxu0 %vm489_vm2, %v416_v7 }
  0xa4   : > { %832 = vmatprep.mubr.f32.mxu0 %v2182_v0 }
 0x176   : > { %v562_v9 = vpop.f32.mrb[0].mxu0 }
 0x177   : > { %568 = vperm.xlu0 %2130, %v562_v9   ;;  %v2062_v10 = vpop.f32.mrb[1].mxu0  ;;  %v445_v9 = vld [vmem:[%s3040_s4 + $0x98] sm:$0xff] }
 0x178   : > { %v446_v10 = vld [vmem:[%s3040_s4 + $0xa0] sm:$0xff] }
 0x17b   : > { %1341 = vperm.xlu0 %2130, %v453_v11  }
 0x1f6   : > { %v569_v12 = vpop.permute.xlu0 %568 }
 0x1f7   : > { %v571_v13 = vsub.f32 %v481_v1, %v569_v12  ;;  %v572_v14 = vsub.f32 %v482_v2, %v569_v12  ;;  %v437_v1 = vld [vmem:[%s3040_s4 + $0x58] sm:$0xff]  ;;  %v438_v2 = vld [vmem:[%s3040_s4 + $0x60] sm:$0xff] }
 0x1f9   : > { %v573_v15 = vmul.f32 %v571_v13, %v571_v13  ;;  %v574_v16 = vmul.f32 %v572_v14, %v572_v14 }
 0x1fb   : > { %v575_v17 = vsel %vm483_vm0, %v573_v15, 0.0  ;;  %v576_v18 = vsel %vm483_vm0, %v574_v16, 0.0 }
 0x1fc   : > { %v577_v19 = vadd.f32 %v576_v18, %v575_v17 }
 0x1fe   : > { %578 = vadd.xlane.f32.xlu1 %v577_v19 }
 0x28b   : > { %v579_v20 = vpop.xlane.xlu1 %578 }
 0x28c   : > { %2064 = vmatpush3.msk.msra.mxu1 %vm483_vm0, %v579_v20 }
 0x28d   : > { %2066 = vmatmul.mubr.msk.f32.vlgmr.msra.gmra.mrb[0].mxu1 %vm489_vm2, %v416_v7  ;;  %v443_v7 = vld [vmem:[%s3040_s4 + $0x88] sm:$0xff] }
 0x28e   : > { %958 = vmatprep.mubr.f32.mxu1 %v2182_v0 }
 0x360   : > { %v649_v21 = vpop.f32.mrb[0].mxu1 }
 0x361   : > { %v650_v22 = vadd.f32 1e-05, %v649_v21  ;;  %v2067_v23 = vpop.f32.mrb[1].mxu1 }
 0x363   : > { %2132 = vrsqrt.f32 %v650_v22 }
 0x36d   : > { %v2133_v25 = vpop.eup %2132 }
 0x36e   : > { %v654_v26 = vmul.f32 %v2133_v25, %v414_v24 }
 0x370   : > { %657 = vperm.xlu1 %2131, %v654_v26  }
 0x374   : > { %664 = vperm.xlu1 %2131, %v415_v27  }
 0x378   : > { %1346 = vperm.xlu1 %2131, %v454_v28  }
 0x3ef   : > { %v658_v29 = vpop.permute.xlu1 %657 }
 0x3f0   : > { %v660_v30 = vmul.f32 %v658_v29, %v571_v13  ;;  %v661_v31 = vmul.f32 %v658_v29, %v572_v14 }
 0x3f3   : > { %v665_v32 = vpop.permute.xlu1 %664 }
 0x3f4   : > { %v667_v33 = vadd.f32 %v665_v32, %v660_v30  ;;  %v668_v34 = vadd.f32 %v665_v32, %v661_v31 }
 0x3f6   : > { %v669_v35 = vsub.f32 0.0, %v667_v33  ;;  %v670_v36 = vsub.f32 0.0, %v668_v34 }
 0x3f8   : > { %v671_v37 = vmul.f32 1.442695, %v669_v35  ;;  %v673_v38 = vmul.f32 1.442695, %v670_v36 }
 0x3fa   : > { %2134 = vpow2.f32 %v671_v37 }
 0x3fb   : > { %2136 = vpow2.f32 %v673_v38 }
 0x404   : > { %v2135_v39 = vpop.eup %2134 }
 0x405   : > { %v2137_v40 = vpop.eup %2136  ;;  %v675_v41 = vadd.f32 1.0, %v2135_v39 }
 0x406   : > { %v676_v42 = vadd.f32 1.0, %v2137_v40 }
 0x407   : > { %2138 = vrcp.f32 %v675_v41 }
 0x408   : > { %2140 = vrcp.f32 %v676_v42 }
 0x411   : > { %v2139_v43 = vpop.eup %2138 }
 0x412   : > { %v2141_v44 = vpop.eup %2140  ;;  %v679_v45 = vmul.f32 %v2139_v43, %v667_v33 }
 0x413   : > { %v680_v46 = vmul.f32 %v2141_v44, %v668_v34 }
 0x415   : > { %1990 = vmatprep.subr.msk.mxu0 %vm483_vm0, %v680_v46  ;;  %2108 = vmatprep.subr.msk.mxu1 %vm483_vm0, %v680_v46 }
 0x416   : > { %1991 = vmatpush1.msk.msra.mxu0 %vm483_vm0, %v679_v45  ;;  %2109 = vmatpush1.msk.msra.mxu1 %vm483_vm0, %v679_v45 }
 0x417   : > { %1992 = vmatmul.mubr.msk.f32.vlgmr.msra.gmra.mrb[2].mxu0 %vm489_vm2, %v426_v47  ;;  %2013 = vmatmul.mubr.msk.f32.vlgmr.msra.gmra.mrb[2].mxu1 %vm489_vm2, %v447_v48 }
 0x418   : > { %838 = vmatprep.mubr.f32.mxu0 %v2182_v0  ;;  %964 = vmatprep.mubr.f32.mxu1 %v2182_v0 }
 0x41b   : > { %1993 = vmatmul.mubr.msk.f32.gmra.mrb[4].mxu0 %vm489_vm2, %v427_v49  ;;  %2014 = vmatmul.mubr.msk.f32.gmra.mrb[4].mxu1 %vm489_vm2, %v448_v50 }
 0x41c   : > { %844 = vmatprep.mubr.f32.mxu0 %v2182_v0  ;;  %970 = vmatprep.mubr.f32.mxu1 %v2182_v0 }
 0x41f   : > { %1994 = vmatmul.mubr.msk.f32.gmra.mrb[6].mxu0 %vm489_vm2, %v428_v51  ;;  %2015 = vmatmul.mubr.msk.f32.gmra.mrb[6].mxu1 %vm489_vm2, %v449_v52 }
 0x420   : > { %850 = vmatprep.mubr.f32.mxu0 %v2182_v0  ;;  %976 = vmatprep.mubr.f32.mxu1 %v2182_v0 }
 0x423   : > { %1995 = vmatmul.mubr.msk.f32.gmra.mrb[8].mxu0 %vm489_vm2, %v429_v53  ;;  %2016 = vmatmul.mubr.msk.f32.gmra.mrb[8].mxu1 %vm489_vm2, %v450_v54 }
 0x424   : > { %856 = vmatprep.mubr.f32.mxu0 %v2182_v0  ;;  %982 = vmatprep.mubr.f32.mxu1 %v2182_v0 }
 0x427   : > { %1996 = vmatmul.mubr.msk.f32.gmra.mrb[10].mxu0 %vm489_vm2, %v430_v55  ;;  %2017 = vmatmul.mubr.msk.f32.gmra.mrb[10].mxu1 %vm489_vm2, %v451_v56 }
 0x428   : > { %862 = vmatprep.mubr.f32.mxu0 %v2182_v0  ;;  %988 = vmatprep.mubr.f32.mxu1 %v2182_v0 }
 0x42b   : > { %1997 = vmatmul.mubr.msk.f32.gmra.mrb[12].mxu0 %vm489_vm2, %v431_v57  ;;  %2018 = vmatmul.mubr.msk.f32.gmra.mrb[12].mxu1 %vm489_vm2, %v452_v58 }
 0x42c   : > { %868 = vmatprep.mubr.f32.mxu0 %v2182_v0  ;;  %2074 = vmatprep.mubr.msk.f32.mxu1 %vm2183_vm1, %v2182_v0 }
 0x42f   : > { %1998 = vmatmul.mubr.msk.f32.gmra.mrb[14].mxu0 %vm489_vm2, %v432_v59 }
 0x430   : > { %874 = vmatprep.mubr.f32.mxu0 %v2182_v0 }
 0x433   : > { %1999 = vmatmul.mubr.msk.f32.gmra.mrb[16].mxu0 %vm489_vm2, %v433_v60 }
 0x434   : > { %880 = vmatprep.mubr.f32.mxu0 %v2182_v0 }
 0x437   : > { %2000 = vmatmul.mubr.msk.f32.gmra.mrb[18].mxu0 %vm489_vm2, %v434_v61 }
 0x438   : > { %886 = vmatprep.mubr.f32.mxu0 %v2182_v0 }
 0x43b   : > { %2001 = vmatmul.mubr.msk.f32.gmra.mrb[20].mxu0 %vm489_vm2, %v435_v62 }
 0x43c   : > { %892 = vmatprep.mubr.f32.mxu0 %v2182_v0 }
 0x43f   : > { %2002 = vmatmul.mubr.msk.f32.gmra.mrb[22].mxu0 %vm489_vm2, %v436_v63  ;;  %v455_v63 = vld [vmem:[%s3041_s5 + $0x10] sm:$0x3] }
 0x440   : > { %898 = vmatprep.mubr.f32.mxu0 %v2182_v0 }
 0x443   : > { %2003 = vmatmul.mubr.msk.f32.gmra.mrb[24].mxu0 %vm489_vm2, %v437_v1 }
 0x444   : > { %904 = vmatprep.mubr.f32.mxu0 %v2182_v0 }
 0x447   : > { %2004 = vmatmul.mubr.msk.f32.gmra.mrb[26].mxu0 %vm489_vm2, %v438_v2 }
 0x448   : > { %910 = vmatprep.mubr.f32.mxu0 %v2182_v0 }
 0x44b   : > { %2005 = vmatmul.mubr.msk.f32.gmra.mrb[28].mxu0 %vm489_vm2, %v439_v3  ;;  %v2521_v3 = vpop.permute.xlu0 %1341 }
 0x44c   : > { %916 = vmatprep.mubr.f32.mxu0 %v2182_v0 }
 0x44f   : > { %2006 = vmatmul.mubr.msk.f32.gmra.mrb[30].mxu0 %vm489_vm2, %v440_v4  ;;  %v2523_v4 = vpop.permute.xlu1 %1346 }
 0x450   : > { %922 = vmatprep.mubr.f32.mxu0 %v2182_v0 }
 0x453   : > { %2007 = vmatmul.mubr.msk.f32.gmra.mrb[32].mxu0 %vm489_vm2, %v441_v5  ;;  %v1007_v5 = vlaneseq }
 0x454   : > { %928 = vmatprep.mubr.f32.mxu0 %v2182_v0 }
 0x457   : > { %2008 = vmatmul.mubr.msk.f32.gmra.mrb[34].mxu0 %vm489_vm2, %v442_v6 }
 0x458   : > { %934 = vmatprep.mubr.f32.mxu0 %v2182_v0 }
 0x45b   : > { %2009 = vmatmul.mubr.msk.f32.gmra.mrb[36].mxu0 %vm489_vm2, %v443_v7 }
 0x45c   : > { %940 = vmatprep.mubr.f32.mxu0 %v2182_v0 }
 0x45f   : > { %2010 = vmatmul.mubr.msk.f32.gmra.mrb[38].mxu0 %vm489_vm2, %v444_v8  ;;  %v2525_v8 = vand.u32 127, %v1007_v5 }
 0x460   : > { %946 = vmatprep.mubr.f32.mxu0 %v2182_v0 }
 0x461   : > { %vm1267_vm3 = vcmp.lt.s32.totalorder %v2525_v8, 112  ;;  %vm1009_vm4 = vcmp.lt.s32.totalorder %v2525_v8, 17  ;;  %vm1051_vm5 = vcmp.lt.s32.totalorder %v2525_v8, 16  ;;  %vm1093_vm6 = vcmp.lt.s32.totalorder %v2525_v8, 15 }
 0x462   : > { %vm1135_vm7 = vcmp.lt.s32.totalorder %v2525_v8, 1  ;;  %vm1183_vm8 = vcmp.lt.s32.totalorder %v2525_v8, 127  ;;  %vm1225_vm9 = vcmp.lt.s32.totalorder %v2525_v8, 113  ;;  %vm1309_vm10 = vcmp.lt.s32.totalorder %v2525_v8, 111 }
 0x463   : > { %2011 = vmatmul.mubr.msk.f32.gmra.mrb[40].mxu0 %vm489_vm2, %v445_v9 }
 0x464   : > { %952 = vmatprep.mubr.f32.mxu0 %v2182_v0 }
 0x467   : > { %2012 = vmatmul.mubr.msk.f32.gmra.mrb[42].mxu0 %vm489_vm2, %v446_v10 }
 0x4ea   : > { %v834_v11 = vpop.f32.mrb[2].mxu0  ;;  %v960_v12 = vpop.f32.mrb[2].mxu1 }
 0x4eb   : > { %1255 = vrot.lane.b32.xlu0 %v960_v12, %s2185_s17  ;;  %995 = vrot.lane.b32.xlu1 %v834_v11, %s2186_s18  ;;  %v836_v13 = vpop.f32.mrb[3].mxu0  ;;  %v962_v14 = vpop.f32.mrb[3].mxu1 }
 0x4ee   : > { %v840_v15 = vpop.f32.mrb[4].mxu0  ;;  %v966_v16 = vpop.f32.mrb[4].mxu1 }
 0x4ef   : > { %1261 = vrot.lane.b32.xlu0 %v962_v14, %s2185_s17  ;;  %1001 = vrot.lane.b32.xlu1 %v836_v13, %s2186_s18  ;;  %v842_v17 = vpop.f32.mrb[5].mxu0  ;;  %v968_v18 = vpop.f32.mrb[5].mxu1 }
 0x4f2   : > { %v846_v19 = vpop.f32.mrb[6].mxu0  ;;  %v972_v20 = vpop.f32.mrb[6].mxu1 }
 0x4f3   : > { %997 = vrot.lane.b32.xlu1 %v840_v15, %s2186_s18  ;;  %999 = vrot.lane.b32.xlu0 %v846_v19, %s2186_s18  ;;  %v2455_v21 = vpop.f32.mrb[7].mxu1  ;;  %v848_v22 = vpop.f32.mrb[7].mxu0 }
 0x4f6   : > { %v978_v23 = vpop.f32.mrb[8].mxu1  ;;  %v852_v24 = vpop.f32.mrb[8].mxu0 }
 0x4f7   : > { %1257 = vrot.lane.b32.xlu1 %v966_v16, %s2185_s17  ;;  %1259 = vrot.lane.b32.xlu0 %v972_v20, %s2185_s17  ;;  %v854_v25 = vpop.f32.mrb[9].mxu0  ;;  %v980_v26 = vpop.f32.mrb[9].mxu1 }
 0x4fa   : > { %v858_v27 = vpop.f32.mrb[10].mxu0  ;;  %v984_v28 = vpop.f32.mrb[10].mxu1 }
 0x4fb   : > { %1003 = vrot.lane.b32.xlu1 %v842_v17, %s2186_s18  ;;  %1297 = vrot.lane.b32.xlu0 %v978_v23, %s3050_s19  ;;  %v860_v29 = vpop.f32.mrb[11].mxu0  ;;  %v986_v30 = vpop.f32.mrb[11].mxu1 }
 0x4fe   : > { %v864_v31 = vpop.f32.mrb[12].mxu0  ;;  %v2461_v32 = vpop.f32.mrb[12].mxu1 }
 0x4ff   : > { %1263 = vrot.lane.b32.xlu1 %v968_v18, %s2185_s17  ;;  %1045 = vrot.lane.b32.xlu0 %v854_v25, %s2188_s20  ;;  %v866_v33 = vpop.f32.mrb[13].mxu0  ;;  %v2465_v34 = vpop.f32.mrb[13].mxu1 }
 0x502   : > { %v870_v35 = vpop.f32.mrb[14].mxu0 }
 0x503   : > { %1005 = vrot.lane.b32.xlu1 %v848_v22, %s2186_s18  ;;  %1303 = vrot.lane.b32.xlu0 %v980_v26, %s3050_s19  ;;  %v872_v36 = vpop.f32.mrb[15].mxu0 }
 0x506   : > { %v876_v37 = vpop.f32.mrb[16].mxu0 }
 0x507   : > { %1039 = vrot.lane.b32.xlu1 %v852_v24, %s2188_s20  ;;  %1043 = vrot.lane.b32.xlu0 %v864_v31, %s2188_s20  ;;  %v878_v38 = vpop.f32.mrb[17].mxu0 }
 0x50a   : > { %v882_v39 = vpop.f32.mrb[18].mxu0 }
 0x50b   : > { %1041 = vrot.lane.b32.xlu1 %v858_v27, %s2188_s20  ;;  %1081 = vrot.lane.b32.xlu0 %v870_v35, %s2189_s24  ;;  %v884_v40 = vpop.f32.mrb[19].mxu0 }
 0x50e   : > { %v888_v41 = vpop.f32.mrb[20].mxu0 }
 0x50f   : > { %1299 = vrot.lane.b32.xlu1 %v984_v28, %s3050_s19  ;;  %1087 = vrot.lane.b32.xlu0 %v872_v36, %s2189_s24  ;;  %v890_v42 = vpop.f32.mrb[21].mxu0  ;;  %v1979_v36 = vld [vmem:[%s3047_s11 + $0x2] sm:$0x3] }
 0x512   : > { %v894_v43 = vpop.f32.mrb[22].mxu0 }
 0x513   : > { %1047 = vrot.lane.b32.xlu1 %v860_v29, %s2188_s20  ;;  %1085 = vrot.lane.b32.xlu0 %v882_v39, %s2189_s24  ;;  %v896_v44 = vpop.f32.mrb[23].mxu0  ;;  %v466_v39 = vld [vmem:[%s3047_s11] sm:$0x3] }
 0x516   : > { %v900_v45 = vpop.f32.mrb[24].mxu0 }
 0x517   : > { %1305 = vrot.lane.b32.xlu1 %v986_v30, %s3050_s19  ;;  %1123 = vrot.lane.b32.xlu0 %v888_v41, %s2190_s25  ;;  %v902_v46 = vpop.f32.mrb[25].mxu0 }
 0x51a   : > { %v2479_v47 = vpop.f32.mrb[26].mxu0 }
 0x51b   : > { %1049 = vrot.lane.b32.xlu1 %v866_v33, %s2188_s20  ;;  %1129 = vrot.lane.b32.xlu0 %v890_v42, %s2190_s25  ;;  %v2483_v48 = vpop.f32.mrb[27].mxu0  ;;  %v1018_v33 = vshrl.u32 %v1007_v5, 7 }
 0x51e   : > { %v2485_v49 = vpop.f32.mrb[28].mxu0 }
 0x51f   : > { %1083 = vrot.lane.b32.xlu1 %v876_v37, %s2189_s24  ;;  %1127 = vrot.lane.b32.xlu0 %v900_v45, %s2190_s25  ;;  %v2489_v50 = vpop.f32.mrb[29].mxu0  ;;  %v2572_v37 = vsub.s32 0, %v1018_v33 }
 0x521   : > { %v2584_v41 = vrot.slane %v1979_v36, %v2572_v37 }
 0x522   : > { %v2491_v51 = vpop.f32.mrb[30].mxu0 }
 0x523   : > { %1089 = vrot.lane.b32.xlu1 %v878_v38, %s2189_s24  ;;  %v2494_v52 = vpop.f32.mrb[31].mxu0  ;;  %v2574_v38 = vsub.s32 1, %v1018_v33 }
 0x525   : > { %v2587_v42 = vrot.slane %v1979_v36, %v2574_v38 }
 0x526   : > { %v924_v53 = vpop.f32.mrb[32].mxu0 }
 0x527   : > { %1091 = vrot.lane.b32.xlu1 %v884_v40, %s2189_s24  ;;  %1171 = vrot.lane.b32.xlu0 %v924_v53, %s2191_s27  ;;  %v926_v54 = vpop.f32.mrb[33].mxu0  ;;  %v1980_v40 = vld [vmem:[%s3047_s11 + $0x4] sm:$0x3]  ;;  %v2595_v53 = vrot.slane %v466_v39, %v2572_v37 }
 0x52a   : > { %v930_v55 = vpop.f32.mrb[34].mxu0 }
 0x52b   : > { %1125 = vrot.lane.b32.xlu1 %v894_v43, %s2190_s25  ;;  %1177 = vrot.lane.b32.xlu0 %v926_v54, %s2191_s27  ;;  %v932_v56 = vpop.f32.mrb[35].mxu0  ;;  %v2598_v54 = vrot.slane %v466_v39, %v2574_v38 }
 0x52e   : > { %v936_v57 = vpop.f32.mrb[36].mxu0 }
 0x52f   : > { %1131 = vrot.lane.b32.xlu1 %v896_v44, %s2190_s25  ;;  %1175 = vrot.lane.b32.xlu0 %v936_v57, %s2191_s27  ;;  %v938_v58 = vpop.f32.mrb[37].mxu0  ;;  %v1981_v57 = vld [vmem:[%s3047_s11 + $0x6] sm:$0x3] }
 0x530   : > { %v2623_v5 = vrot.slane %v1981_v57, %v2572_v37 }
 0x532   : > { %v942_v59 = vpop.f32.mrb[38].mxu0 }
 0x533   : > { %1133 = vrot.lane.b32.xlu1 %v902_v46, %s2190_s25  ;;  %1213 = vrot.lane.b32.xlu0 %v942_v59, %s2192_s28  ;;  %v944_v60 = vpop.f32.mrb[39].mxu0 }
 0x536   : > { %v948_v61 = vpop.f32.mrb[40].mxu0 }
 0x537   : > { %1173 = vrot.lane.b32.xlu1 %v930_v55, %s2191_s27  ;;  %1219 = vrot.lane.b32.xlu0 %v944_v60, %s2192_s28  ;;  %v950_v62 = vpop.f32.mrb[41].mxu0  ;;  %v2601_v55 = vrot.slane %v1980_v40, %v2572_v37 }
 0x53a   : > { %v954_v1 = vpop.f32.mrb[42].mxu0 }
 0x53b   : > { %1179 = vrot.lane.b32.xlu1 %v932_v56, %s2191_s27  ;;  %1351 = vperm.xlu0 %2130, %v455_v63   ;;  %v956_v2 = vpop.f32.mrb[43].mxu0  ;;  %v2604_v56 = vrot.slane %v1980_v40, %v2574_v38 }
 0x53f   : > { %1181 = vrot.lane.b32.xlu1 %v938_v58, %s2191_s27  ;;  %1217 = vrot.lane.b32.xlu0 %v954_v1, %s2192_s28 }
 0x543   : > { %1215 = vrot.lane.b32.xlu1 %v948_v61, %s2192_s28  ;;  %1307 = vrot.lane.b32.xlu0 %v2465_v34, %s3050_s19 }
 0x547   : > { %1221 = vrot.lane.b32.xlu1 %v950_v62, %s2192_s28 }
 0x54b   : > { %1265 = vrot.lane.b32.xlu1 %v2455_v21, %s2185_s17 }
 0x54f   : > { %1223 = vrot.lane.b32.xlu1 %v956_v2, %s2192_s28 }
 0x553   : > { %1301 = vrot.lane.b32.xlu1 %v2461_v32, %s3050_s19 }
 0x55d   : > { %v1256_v6 = vpop.permute.xlu0 %1255  ;;  %v996_v7 = vpop.permute.xlu1 %995 }
 0x561   : > { %v1262_v9 = vpop.permute.xlu0 %1261  ;;  %v1002_v10 = vpop.permute.xlu1 %1001 }
 0x562   : > { %v2530_v11 = vsel %vm1267_vm3, %v1256_v6, %v1262_v9  ;;  %v2534_v12 = vsel %vm1267_vm3, %v1262_v9, %v1256_v6  ;;  %v1010_v58 = vsel %vm1009_vm4, %v996_v7, %v1002_v10  ;;  %v1013_v59 = vsel %vm1009_vm4, %v1002_v10, %v996_v7 }
 0x563   : > { %v2626_v6 = vrot.slane %v1981_v57, %v2574_v38  ;;  %v1027_v7 = vmul.f32 %v2595_v53, %v1013_v59  ;;  %v1028_v9 = vmul.f32 %v2598_v54, %v1010_v58 }
 0x565   : > { %v998_v13 = vpop.permute.xlu1 %997  ;;  %v1000_v14 = vpop.permute.xlu0 %999 }
 0x569   : > { %v1258_v15 = vpop.permute.xlu1 %1257  ;;  %v2536_v16 = vpop.permute.xlu0 %1259 }
 0x56d   : > { %v1004_v17 = vpop.permute.xlu1 %1003  ;;  %v2539_v18 = vpop.permute.xlu0 %1297 }
 0x56e   : > { %v2543_v19 = vsel %vm1009_vm4, %v998_v13, %v1004_v17  ;;  %v2547_v20 = vsel %vm1009_vm4, %v1004_v17, %v998_v13 }
 0x571   : > { %v1264_v21 = vpop.permute.xlu1 %1263  ;;  %v1046_v22 = vpop.permute.xlu0 %1045 }
 0x572   : > { %v2551_v23 = vsel %vm1267_vm3, %v1258_v15, %v1264_v21  ;;  %v2555_v24 = vsel %vm1267_vm3, %v1264_v21, %v1258_v15 }
 0x575   : > { %v1006_v25 = vpop.permute.xlu1 %1005  ;;  %v2557_v26 = vpop.permute.xlu0 %1303 }
 0x576   : > { %v2561_v27 = vsel %vm1009_vm4, %v1000_v14, %v1006_v25  ;;  %v2565_v28 = vsel %vm1009_vm4, %v1006_v25, %v1000_v14 }
 0x579   : > { %v1040_v29 = vpop.permute.xlu1 %1039  ;;  %v1044_v30 = vpop.permute.xlu0 %1043 }
 0x57a   : > { %v1052_v45 = vsel %vm1051_vm5, %v1040_v29, %v1046_v22  ;;  %v1055_v46 = vsel %vm1051_vm5, %v1046_v22, %v1040_v29 }
 0x57b   : > { %v1069_v62 = vmul.f32 %v2584_v41, %v1055_v46  ;;  %v1070_v63 = vmul.f32 %v2587_v42, %v1052_v45 }
 0x57d   : > { %v1042_v31 = vpop.permute.xlu1 %1041  ;;  %v1082_v32 = vpop.permute.xlu0 %1081  ;;  %v1075_v14 = vadd.f32 %v1069_v62, %v1027_v7  ;;  %v1076_v15 = vadd.f32 %v1070_v63, %v1028_v9 }
 0x581   : > { %v2567_v34 = vpop.permute.xlu1 %1299  ;;  %v1088_v35 = vpop.permute.xlu0 %1087 }
 0x582   : > { %v1094_v60 = vsel %vm1093_vm6, %v1082_v32, %v1088_v35  ;;  %v1097_v61 = vsel %vm1093_vm6, %v1088_v35, %v1082_v32 }
 0x583   : > { %v1111_v10 = vmul.f32 %v2601_v55, %v1097_v61  ;;  %v1112_v13 = vmul.f32 %v2604_v56, %v1094_v60 }
 0x585   : > { %v1048_v43 = vpop.permute.xlu1 %1047  ;;  %v1086_v44 = vpop.permute.xlu0 %1085  ;;  %v1117_v29 = vadd.f32 %v1111_v10, %v1075_v14  ;;  %v1118_v32 = vadd.f32 %v1112_v13, %v1076_v15  ;;  %v1982_v14 = vld [vmem:[%s3047_s11 + $0xa] sm:$0x3] }
 0x586   : > { %v1053_v59 = vsel %vm1051_vm5, %v1042_v31, %v1048_v43  ;;  %v1056_v60 = vsel %vm1051_vm5, %v1048_v43, %v1042_v31  ;;  %v1029_v31 = vmul.f32 %v2595_v53, %v2547_v20  ;;  %v1030_v43 = vmul.f32 %v2598_v54, %v2543_v19 }
 0x587   : > { %v1071_v7 = vmul.f32 %v2584_v41, %v1056_v60  ;;  %v1072_v9 = vmul.f32 %v2587_v42, %v1053_v59 }
 0x589   : > { %v2619_v1 = vpop.permute.xlu1 %1305  ;;  %v1124_v2 = vpop.permute.xlu0 %1123 }
 0x58d   : > { %v1050_v17 = vpop.permute.xlu1 %1049  ;;  %v1130_v21 = vpop.permute.xlu0 %1129 }
 0x58e   : > { %v1136_v22 = vsel %vm1135_vm7, %v1124_v2, %v1130_v21  ;;  %v1139_v25 = vsel %vm1135_vm7, %v1130_v21, %v1124_v2  ;;  %v1054_v63 = vsel %vm1051_vm5, %v1044_v30, %v1050_v17 }
 0x58f   : > { %v1153_v33 = vmul.f32 %v2623_v5, %v1139_v25  ;;  %v1154_v35 = vmul.f32 %v2626_v6, %v1136_v22  ;;  %v1031_v22 = vmul.f32 %v2595_v53, %v2565_v28  ;;  %v1032_v25 = vmul.f32 %v2598_v54, %v2561_v27  ;;  %v1983_v27 = vld [vmem:[%s3047_s11 + $0xc] sm:$0x3] }
 0x591   : > { %v1159_v36 = vadd.f32 %v1153_v33, %v1117_v29  ;;  %v1160_v39 = vadd.f32 %v1154_v35, %v1118_v32  ;;  %v1084_v40 = vpop.permute.xlu1 %1083  ;;  %v1128_v57 = vpop.permute.xlu0 %1127  ;;  %v1077_v29 = vadd.f32 %v1071_v7, %v1029_v31  ;;  %v1078_v32 = vadd.f32 %v1072_v9, %v1030_v43  ;;  %v1984_v43 = vld [vmem:[%s3047_s11 + $0xe] sm:$0x3] }
 0x592   : > { %v2679_v33 = vrot.slane %v1982_v14, %v2572_v37  ;;  %v2682_v35 = vrot.slane %v1982_v14, %v2574_v38  ;;  %v2703_v9 = vrot.slane %v1983_v27, %v2572_v37  ;;  %v2706_v31 = vrot.slane %v1983_v27, %v2574_v38 }
 0x593   : > { %v2639_v45 = vadd.f32 %v1159_v36, %v2479_v47  ;;  %v2642_v46 = vadd.f32 %v1160_v39, %v2483_v48  ;;  %v1057_v47 = vsel %vm1051_vm5, %v1050_v17, %v1044_v30  ;;  %v1074_v30 = vmul.f32 %v2587_v42, %v1054_v63 }
 0x594   : > { %v1073_v10 = vmul.f32 %v2584_v41, %v1057_v47 }
 0x595   : > { %v1090_v58 = vpop.permute.xlu1 %1089  ;;  %v1080_v39 = vadd.f32 %v1074_v30, %v1032_v25 }
 0x596   : > { %v1095_v48 = vsel %vm1093_vm6, %v1084_v40, %v1090_v58  ;;  %v1098_v2 = vsel %vm1093_vm6, %v1090_v58, %v1084_v40  ;;  %v1079_v36 = vadd.f32 %v1073_v10, %v1031_v22 }
 0x597   : > { %v1113_v17 = vmul.f32 %v2601_v55, %v1098_v2  ;;  %v1114_v21 = vmul.f32 %v2604_v56, %v1095_v48 }
 0x599   : > { %v1092_v61 = vpop.permute.xlu1 %1091  ;;  %v1172_v62 = vpop.permute.xlu0 %1171  ;;  %v1119_v59 = vadd.f32 %v1113_v17, %v1077_v29  ;;  %v1120_v60 = vadd.f32 %v1114_v21, %v1078_v32  ;;  %v1985_v17 = vld [vmem:[%s3047_s11 + $0x10] sm:$0x3] }
 0x59a   : > { %v1096_v20 = vsel %vm1093_vm6, %v1086_v44, %v1092_v61  ;;  %v1099_v19 = vsel %vm1093_vm6, %v1092_v61, %v1086_v44 }
 0x59b   : > { %v1115_v44 = vmul.f32 %v2601_v55, %v1099_v19  ;;  %v1116_v40 = vmul.f32 %v2604_v56, %v1096_v20 }
 0x59d   : > { %v1126_v13 = vpop.permute.xlu1 %1125  ;;  %v1178_v15 = vpop.permute.xlu0 %1177  ;;  %v1121_v10 = vadd.f32 %v1115_v44, %v1079_v36  ;;  %v1122_v30 = vadd.f32 %v1116_v40, %v1080_v39  ;;  %v2725_v39 = vrot.slane %v1984_v43, %v2572_v37  ;;  %v2728_v44 = vrot.slane %v1984_v43, %v2574_v38 }
 0x59e   : > { %v1184_v47 = vsel %vm1183_vm8, %v1172_v62, %v1178_v15  ;;  %v1187_v48 = vsel %vm1183_vm8, %v1178_v15, %v1172_v62  ;;  %v2732_v40 = vrot.slane %v1985_v17, %v2572_v37 }
 0x59f   : > { %v1201_v21 = vmul.f32 %v2679_v33, %v1184_v47  ;;  %v1202_v20 = vmul.f32 %v2682_v35, %v1187_v48 }
 0x5a1   : > { %v1132_v28 = vpop.permute.xlu1 %1131  ;;  %v2686_v58 = vpop.permute.xlu0 %1175 }
 0x5a2   : > { %v1137_v61 = vsel %vm1135_vm7, %v1126_v13, %v1132_v28  ;;  %v1140_v63 = vsel %vm1135_vm7, %v1132_v28, %v1126_v13 }
 0x5a3   : > { %v1155_v2 = vmul.f32 %v2623_v5, %v1140_v63  ;;  %v1156_v7 = vmul.f32 %v2626_v6, %v1137_v61 }
 0x5a5   : > { %v1161_v13 = vadd.f32 %v1155_v2, %v1119_v59  ;;  %v1162_v62 = vadd.f32 %v1156_v7, %v1120_v60  ;;  %v1134_v14 = vpop.permute.xlu1 %1133  ;;  %v1214_v15 = vpop.permute.xlu0 %1213  ;;  %v1208_v60 = vadd.f32 %v1202_v20, %v2642_v46  ;;  %v1313_v46 = vsel %vm1309_vm10, %v2557_v26, %v2539_v18 }
 0x5a6   : > { %v1138_v19 = vsel %vm1135_vm7, %v1128_v57, %v1134_v14  ;;  %v1141_v22 = vsel %vm1135_vm7, %v1134_v14, %v1128_v57  ;;  %v2735_v57 = vrot.slane %v1985_v17, %v2574_v38  ;;  %v1285_v2 = vmul.f32 %v2725_v39, %v2530_v11 }
 0x5a7   : > { %v1157_v25 = vmul.f32 %v2623_v5, %v1141_v22  ;;  %v1158_v29 = vmul.f32 %v2626_v6, %v1138_v19  ;;  %v1167_v32 = vadd.f32 %v1161_v13, %v2485_v49  ;;  %v1168_v36 = vadd.f32 %v1162_v62, %v2489_v50 }
 0x5a8   : > { %v1207_v50 = vadd.f32 %v1201_v21, %v2639_v45  ;;  %v1310_v45 = vsel %vm1309_vm10, %v2539_v18, %v2557_v26  ;;  %v1286_v7 = vmul.f32 %v2728_v44, %v2534_v12 }
 0x5a9   : > { %v1163_v28 = vadd.f32 %v1157_v25, %v1121_v10  ;;  %v1164_v27 = vadd.f32 %v1158_v29, %v1122_v30  ;;  %v1174_v59 = vpop.permute.xlu1 %1173  ;;  %v1220_v49 = vpop.permute.xlu0 %1219  ;;  %v1328_v30 = vmul.f32 %v2735_v57, %v1313_v46 }
 0x5aa   : > { %v1226_v61 = vsel %vm1225_vm9, %v1214_v15, %v1220_v49  ;;  %v1229_v63 = vsel %vm1225_vm9, %v1220_v49, %v1214_v15 }
 0x5ab   : > { %v1243_v37 = vmul.f32 %v2703_v9, %v1226_v61  ;;  %v1244_v47 = vmul.f32 %v2706_v31, %v1229_v63  ;;  %v1169_v38 = vadd.f32 %v1163_v28, %v2491_v51  ;;  %v1170_v48 = vadd.f32 %v1164_v27, %v2494_v52 }
 0x5ac   : > { %v1327_v52 = vmul.f32 %v2732_v40, %v1310_v45  ;;  %v1287_v61 = vmul.f32 %v2725_v39, %v2551_v23  ;;  %v1311_v63 = vsel %vm1309_vm10, %v2567_v34, %v2619_v1 }
 0x5ad   : > { %v1249_v43 = vadd.f32 %v1243_v37, %v1207_v50  ;;  %v1250_v51 = vadd.f32 %v1244_v47, %v1208_v60  ;;  %v1180_v10 = vpop.permute.xlu1 %1179 }
 0x5ae   : > { %v1185_v18 = vsel %vm1183_vm8, %v1174_v59, %v1180_v10  ;;  %v1188_v26 = vsel %vm1183_vm8, %v1180_v10, %v1174_v59 }
 0x5af   : > { %v1291_v13 = vadd.f32 %v1285_v2, %v1249_v43  ;;  %v1292_v62 = vadd.f32 %v1286_v7, %v1250_v51  ;;  %v1203_v19 = vmul.f32 %v2679_v33, %v1185_v18  ;;  %v1204_v22 = vmul.f32 %v2682_v35, %v1188_v26 }
 0x5b0   : > { %v1329_v7 = vmul.f32 %v2732_v40, %v1311_v63 }
 0x5b1   : > { %v1182_v14 = vpop.permute.xlu1 %1181  ;;  %v1333_v15 = vadd.f32 %v1327_v52, %v1291_v13  ;;  %v1334_v17 = vadd.f32 %v1328_v30, %v1292_v62  ;;  %v1209_v29 = vadd.f32 %v1203_v19, %v1167_v32  ;;  %v1210_v49 = vadd.f32 %v1204_v22, %v1168_v36 }
 0x5b2   : > { %v1186_v28 = vsel %vm1183_vm8, %v2686_v58, %v1182_v14  ;;  %v1189_v50 = vsel %vm1183_vm8, %v1182_v14, %v2686_v58  ;;  %v1314_v36 = vsel %vm1309_vm10, %v2619_v1, %v2567_v34  ;;  %v1288_v58 = vmul.f32 %v2728_v44, %v2555_v24 }
 0x5b3   : > { %v2764_v11 = vadd.f32 %v2521_v3, %v1333_v15  ;;  %v2767_v12 = vadd.f32 %v2521_v3, %v1334_v17  ;;  %v1205_v37 = vmul.f32 %v2679_v33, %v1186_v28  ;;  %v1206_v23 = vmul.f32 %v2682_v35, %v1189_v50 }
 0x5b4   : > { %v1330_v43 = vmul.f32 %v2735_v57, %v1314_v36 }
 0x5b5   : > { %v1216_v21 = vpop.permute.xlu1 %1215  ;;  %v1360_v20 = vadd.f32 %v2767_v12, %v2764_v11  ;;  %v1211_v52 = vadd.f32 %v1205_v37, %v1169_v38  ;;  %v1212_v13 = vadd.f32 %v1206_v23, %v1170_v48  ;;  %v2193_v37 = vmov 0.0|0.0   ;;  %v423_v23 = vld [vmem:[%s3044_s8] sm:$0xff] }
 0x5b6   : > { %2098 = vmatprep.subr.bf16.mxu1 %v2193_v37 }
 0x5b7   : > { %1361 = vadd.xlane.f32.xlu1 %v1360_v20 }
 0x5b9   : > { %v1222_v25 = vpop.permute.xlu1 %1221 }
 0x5ba   : > { %v1227_v3 = vsel %vm1225_vm9, %v1216_v21, %v1222_v25  ;;  %v1230_v27 = vsel %vm1225_vm9, %v1222_v25, %v1216_v21  ;;  %v1352_v59 = vpop.permute.xlu0 %1351 }
 0x5bb   : > { %v1245_v60 = vmul.f32 %v2703_v9, %v1227_v3  ;;  %v1246_v32 = vmul.f32 %v2706_v31, %v1230_v27 }
 0x5bd   : > { %v1251_v47 = vadd.f32 %v1245_v60, %v1209_v29  ;;  %v1252_v45 = vadd.f32 %v1246_v32, %v1210_v49  ;;  %v1266_v46 = vpop.permute.xlu1 %1265 }
 0x5be   : > { %v1218_v2 = vpop.permute.xlu0 %1217  ;;  %v1270_v34 = vsel %vm1267_vm3, %v2536_v16, %v1266_v46  ;;  %v1273_v62 = vsel %vm1267_vm3, %v1266_v46, %v2536_v16 }
 0x5bf   : > { %v1293_v51 = vadd.f32 %v1287_v61, %v1251_v47  ;;  %v1294_v10 = vadd.f32 %v1288_v58, %v1252_v45  ;;  %v1289_v48 = vmul.f32 %v2725_v39, %v1270_v34  ;;  %v1290_v20 = vmul.f32 %v2728_v44, %v1273_v62 }
 0x5c1   : > { %v1224_v24 = vpop.permute.xlu1 %1223  ;;  %v1335_v1 = vadd.f32 %v1329_v7, %v1293_v51  ;;  %v1336_v30 = vadd.f32 %v1330_v43, %v1294_v10  ;;  %v425_v7 = vld [vmem:[%s3044_s8 + $0x10] sm:$0x3] }
 0x5c2   : > { %v1228_v14 = vsel %vm1225_vm9, %v1218_v2, %v1224_v24  ;;  %v1231_v15 = vsel %vm1225_vm9, %v1224_v24, %v1218_v2  ;;  %v1308_v18 = vpop.permute.xlu0 %1307  ;;  %v424_v2 = vld [vmem:[%s3044_s8 + $0x8] sm:$0xff] }
 0x5c3   : > { %v1247_v38 = vmul.f32 %v2703_v9, %v1228_v14  ;;  %v1248_v17 = vmul.f32 %v2706_v31, %v1231_v15  ;;  %v1356_v26 = vadd.f32 %v2523_v4, %v1335_v1  ;;  %v1357_v21 = vadd.f32 %v2523_v4, %v1336_v30 }
 0x5c5   : > { %v1253_v16 = vadd.f32 %v1247_v38, %v1211_v52  ;;  %v1254_v19 = vadd.f32 %v1248_v17, %v1212_v13  ;;  %v1302_v22 = vpop.permute.xlu1 %1301  ;;  %v1363_v25 = vadd.f32 %v1357_v21, %v1356_v26 }
 0x5c6   : > { %v1312_v29 = vsel %vm1309_vm10, %v1302_v22, %v1308_v18  ;;  %v1315_v28 = vsel %vm1309_vm10, %v1308_v18, %v1302_v22 }
 0x5c7   : > { %v1295_v3 = vadd.f32 %v1289_v48, %v1253_v16  ;;  %v1296_v27 = vadd.f32 %v1290_v20, %v1254_v19  ;;  %v1331_v49 = vmul.f32 %v2732_v40, %v1312_v29  ;;  %v1332_v4 = vmul.f32 %v2735_v57, %v1315_v28  ;;  %1364 = vadd.xlane.f32.xlu0 %v1363_v25 }
 0x5c9   : > { %v1337_v50 = vadd.f32 %v1331_v49, %v1295_v3  ;;  %v1338_v60 = vadd.f32 %v1332_v4, %v1296_v27 }
 0x5cb   : > { %v1358_v32 = vadd.f32 %v1352_v59, %v1337_v50  ;;  %v1359_v61 = vadd.f32 %v1352_v59, %v1338_v60 }
 0x5cd   : > { %v1367_v63 = vsel %vm1366_vm11, %v1358_v32, 0.0  ;;  %v1368_v36 = vsel %vm1366_vm11, %v1359_v61, 0.0 }
 0x5ce   : > { %v1369_v58 = vadd.f32 %v1368_v36, %v1367_v63 }
 0x5d0   : > { %1370 = vadd.xlane.f32.xlu0 %v1369_v58 }
 0x644   : > { %v1362_v47 = vpop.xlane.xlu1 %1361 }
 0x654   : > { %v1365_v45 = vpop.xlane.xlu0 %1364 }
 0x655   : > { %v2099_v46 = vpack.c.bf16 %v1365_v45, %v1362_v47  ;;  %v417_v47 = vld [vmem:[%s3042_s6] sm:$0xff] }
 0x657   : > { %2100 = vmatpush3.bf16.msra.mxu1 %v2099_v46 }
 0x658   : > { %2072 = vmatprep.subr.mxu1 %v2182_v0 }
 0x65d   : > { %v1371_v59 = vpop.xlane.xlu0 %1370 }
 0x65e   : > { %2073 = vmatpush3.msk.msra.mxu1 %vm1366_vm11, %v1371_v59 }
 0x65f   : > { %2075 = vmatmul.mubr.msk.f32.vlgmr.msra.gmra.mrb[14].mxu1 %vm1372_vm12, %v423_v23  ;;  %2101 = vmatprep.subr.bf16.mxu1 %v2193_v37 }
 0x660   : > { %2077 = vmatprep.mubr.msk.f32.mxu1 %vm2183_vm1, %v2182_v0 }
 0x663   : > { %2078 = vmatmul.mubr.msk.f32.gmra.mrb[16].mxu1 %vm1372_vm12, %v424_v2 }
 0x664   : > { %2080 = vmatprep.mubr.msk.f32.mxu1 %vm2183_vm1, %v2182_v0 }
 0x667   : > { %2081 = vmatmul.mubr.msk.f32.gmra.mrb[18].mxu1 %vm1372_vm12, %v425_v7 }
 0x668   : > { %2089 = vmatprep.mubr.msk.f32.mxu1 %vm2183_vm1, %v2182_v0 }
 0x732   : > { %v1451_v43 = vpop.f32.mrb[14].mxu1 }
 0x733   : > { %1467 = vperm.xlu1 %2131, %v1451_v43   ;;  %v2076_v51 = vpop.f32.mrb[15].mxu1  ;;  %v419_v43 = vld [vmem:[%s3042_s6 + $0x10] sm:$0x3] }
 0x736   : > { %v1456_v10 = vpop.f32.mrb[16].mxu1 }
 0x737   : > { %1472 = vperm.xlu0 %2130, %v1456_v10   ;;  %v2079_v52 = vpop.f32.mrb[17].mxu1  ;;  %v421_v10 = vld [vmem:[%s3043_s7 + $0x8] sm:$0xff] }
 0x73a   : > { %v1461_v34 = vpop.f32.mrb[18].mxu1 }
 0x73b   : > { %1477 = vperm.xlu1 %2131, %v1461_v34   ;;  %v2082_v24 = vpop.f32.mrb[19].mxu1  ;;  %v422_v34 = vld [vmem:[%s3043_s7 + $0x10] sm:$0x3] }
 0x73c   : > { %v465_v24 = vld [vmem:[%s3046_s10] sm:$0x3f] }
 0x7b2   : > { %v1468_v1 = vpop.permute.xlu1 %1467 }
 0x7b3   : > { %v2848_v30 = vsub.f32 %v2764_v11, %v1468_v1  ;;  %v2851_v13 = vsub.f32 %v2767_v12, %v1468_v1 }
 0x7b5   : > { %v1486_v62 = vmul.f32 %v2848_v30, %v2848_v30  ;;  %v1487_v14 = vmul.f32 %v2851_v13, %v2851_v13 }
 0x7b6   : > { %v1473_v15 = vpop.permute.xlu0 %1472 }
 0x7b7   : > { %v2857_v38 = vsub.f32 %v1356_v26, %v1473_v15  ;;  %v2859_v17 = vsub.f32 %v1357_v21, %v1473_v15  ;;  %v1492_v18 = vadd.f32 %v1487_v14, %v1486_v62 }
 0x7b9   : > { %1493 = vadd.xlane.f32.xlu1 %v1492_v18  ;;  %v1488_v11 = vmul.f32 %v2857_v38, %v2857_v38  ;;  %v1489_v12 = vmul.f32 %v2859_v17, %v2859_v17 }
 0x7ba   : > { %v1478_v48 = vpop.permute.xlu1 %1477 }
 0x7bb   : > { %v2865_v20 = vsub.f32 %v1358_v32, %v1478_v48  ;;  %v2867_v16 = vsub.f32 %v1359_v61, %v1478_v48  ;;  %v1495_v19 = vadd.f32 %v1489_v12, %v1488_v11 }
 0x7bd   : > { %v1490_v26 = vmul.f32 %v2865_v20, %v2865_v20  ;;  %v1491_v21 = vmul.f32 %v2867_v16, %v2867_v16  ;;  %1496 = vadd.xlane.f32.xlu0 %v1495_v19 }
 0x7bf   : > { %v1498_v22 = vsel %vm1366_vm11, %v1490_v26, 0.0  ;;  %v1499_v25 = vsel %vm1366_vm11, %v1491_v21, 0.0 }
 0x7c0   : > { %v1500_v29 = vadd.f32 %v1499_v25, %v1498_v22 }
 0x7c2   : > { %1501 = vadd.xlane.f32.xlu0 %v1500_v29 }
 0x846   : > { %v1494_v28 = vpop.xlane.xlu1 %1493 }
 0x84a   : > { %v1497_v3 = vpop.xlane.xlu0 %1496 }
 0x84b   : > { %v2102_v27 = vpack.c.bf16 %v1497_v3, %v1494_v28 }
 0x84d   : > { %2103 = vmatpush3.bf16.msra.mxu1 %v2102_v27 }
 0x84e   : > { %2087 = vmatprep.subr.mxu1 %v2182_v0 }
 0x84f   : > { %v1502_v49 = vpop.xlane.xlu0 %1501 }
 0x851   : > { %2088 = vmatpush3.msk.msra.mxu1 %vm1366_vm11, %v1502_v49 }
 0x852   : > { %2090 = vmatmul.mubr.msk.f32.vlgmr.msra.gmra.mrb[20].mxu1 %vm1372_vm12, %v423_v23  ;;  %v418_v23 = vld [vmem:[%s3042_s6 + $0x8] sm:$0xff] }
 0x853   : > { %2092 = vmatprep.mubr.msk.f32.mxu1 %vm2183_vm1, %v2182_v0 }
 0x856   : > { %2093 = vmatmul.mubr.msk.f32.gmra.mrb[22].mxu1 %vm1372_vm12, %v424_v2  ;;  %v420_v2 = vld [vmem:[%s3043_s7] sm:$0xff] }
 0x857   : > { %2095 = vmatprep.mubr.msk.f32.mxu1 %vm2183_vm1, %v2182_v0 }
 0x85a   : > { %2096 = vmatmul.mubr.msk.f32.gmra.mrb[24].mxu1 %vm1372_vm12, %v425_v7 }
 0x85b   : > { %1767 = vmatprep.mubr.f32.mxu1 %v2182_v0 }
 0x925   : > { %v1572_v4 = vpop.f32.mrb[20].mxu1 }
 0x926   : > { %v1573_v50 = vadd.f32 1e-05, %v1572_v4  ;;  %v2091_v60 = vpop.f32.mrb[21].mxu1 }
 0x928   : > { %2142 = vrsqrt.f32 %v1573_v50 }
 0x929   : > { %v1577_v32 = vpop.f32.mrb[22].mxu1 }
 0x92a   : > { %v1578_v61 = vadd.f32 1e-05, %v1577_v32  ;;  %v2094_v63 = vpop.f32.mrb[23].mxu1 }
 0x92c   : > { %2144 = vrsqrt.f32 %v1578_v61 }
 0x92d   : > { %v1582_v36 = vpop.f32.mrb[24].mxu1 }
 0x92e   : > { %v1583_v58 = vadd.f32 1e-05, %v1582_v36  ;;  %v2097_v37 = vpop.f32.mrb[25].mxu1 }
 0x930   : > { %2146 = vrsqrt.f32 %v1583_v58 }
 0x932   : > { %v2143_v45 = vpop.eup %2142 }
 0x933   : > { %v1589_v46 = vmul.f32 %v2143_v45, %v417_v47 }
 0x935   : > { %1594 = vperm.xlu1 %2131, %v1589_v46  }
 0x936   : > { %v2145_v59 = vpop.eup %2144 }
 0x937   : > { %v1590_v7 = vmul.f32 %v2145_v59, %v418_v23 }
 0x939   : > { %1615 = vperm.xlu1 %2131, %v420_v2   ;;  %1599 = vperm.xlu0 %2130, %v1590_v7  }
 0x93a   : > { %v2147_v51 = vpop.eup %2146 }
 0x93b   : > { %v1591_v52 = vmul.f32 %v2147_v51, %v419_v43 }
 0x93d   : > { %1620 = vperm.xlu1 %2131, %v421_v10   ;;  %1604 = vperm.xlu0 %2130, %v1591_v52  }
 0x941   : > { %1625 = vperm.xlu1 %2131, %v422_v34   ;;  %1906 = vperm.xlu0 %2130, %v465_v24  }
 0x9b4   : > { %v1595_v1 = vpop.permute.xlu1 %1594 }
 0x9b5   : > { %v1607_v62 = vmul.f32 %v1595_v1, %v2848_v30  ;;  %v1608_v14 = vmul.f32 %v1595_v1, %v2851_v13 }
 0x9b8   : > { %v1616_v15 = vpop.permute.xlu1 %1615  ;;  %v1600_v18 = vpop.permute.xlu0 %1599 }
 0x9b9   : > { %v1628_v11 = vadd.f32 %v1616_v15, %v1607_v62  ;;  %v1629_v12 = vadd.f32 %v1616_v15, %v1608_v14  ;;  %v1609_v26 = vmul.f32 %v1600_v18, %v2857_v38  ;;  %v1610_v21 = vmul.f32 %v1600_v18, %v2859_v17 }
 0x9bb   : > { %v1634_v48 = vsub.f32 0.0, %v1628_v11  ;;  %v1635_v19 = vsub.f32 0.0, %v1629_v12 }
 0x9bc   : > { %v1621_v22 = vpop.permute.xlu1 %1620  ;;  %v1605_v25 = vpop.permute.xlu0 %1604 }
 0x9bd   : > { %v1640_v29 = vmul.f32 1.442695, %v1634_v48  ;;  %v1642_v28 = vmul.f32 1.442695, %v1635_v19  ;;  %v1630_v3 = vadd.f32 %v1621_v22, %v1609_v26  ;;  %v1631_v27 = vadd.f32 %v1621_v22, %v1610_v21 }
 0x9be   : > { %v1611_v30 = vmul.f32 %v1605_v25, %v2865_v20  ;;  %v1612_v4 = vmul.f32 %v1605_v25, %v2867_v16  ;;  %v456_v25 = vld [vmem:[%s3045_s9] sm:$0xff] }
 0x9bf   : > { %2148 = vpow2.f32 %v1640_v29  ;;  %v1636_v13 = vsub.f32 0.0, %v1630_v3  ;;  %v1637_v49 = vsub.f32 0.0, %v1631_v27  ;;  %v459_v29 = vld [vmem:[%s3045_s9 + $0x18] sm:$0xff] }
 0x9c0   : > { %2150 = vpow2.f32 %v1642_v28  ;;  %v1626_v50 = vpop.permute.xlu1 %1625  ;;  %v460_v28 = vld [vmem:[%s3045_s9 + $0x20] sm:$0xff] }
 0x9c1   : > { %v1644_v60 = vmul.f32 1.442695, %v1636_v13  ;;  %v1646_v32 = vmul.f32 1.442695, %v1637_v49  ;;  %v1632_v38 = vadd.f32 %v1626_v50, %v1611_v30  ;;  %v1633_v61 = vadd.f32 %v1626_v50, %v1612_v4  ;;  %v463_v30 = vld [vmem:[%s3045_s9 + $0x38] sm:$0xff]  ;;  %v464_v13 = vld [vmem:[%s3045_s9 + $0x40] sm:$0xff] }
 0x9c3   : > { %2152 = vpow2.f32 %v1644_v60  ;;  %v1638_v17 = vsub.f32 0.0, %v1632_v38  ;;  %v1639_v63 = vsub.f32 0.0, %v1633_v61 }
 0x9c4   : > { %2154 = vpow2.f32 %v1646_v32 }
 0x9c5   : > { %v1648_v36 = vmul.f32 1.442695, %v1638_v17  ;;  %v1650_v58 = vmul.f32 1.442695, %v1639_v63 }
 0x9c7   : > { %2156 = vpow2.f32 %v1648_v36 }
 0x9c8   : > { %2158 = vpow2.f32 %v1650_v58 }
 0x9c9   : > { %v2149_v20 = vpop.eup %2148 }
 0x9ca   : > { %v2151_v37 = vpop.eup %2150  ;;  %v1652_v47 = vadd.f32 1.0, %v2149_v20 }
 0x9cb   : > { %v1653_v45 = vadd.f32 1.0, %v2151_v37 }
 0x9cc   : > { %2160 = vrcp.f32 %v1652_v47 }
 0x9cd   : > { %v2153_v46 = vpop.eup %2152  ;;  %2162 = vrcp.f32 %v1653_v45 }
 0x9ce   : > { %v2155_v16 = vpop.eup %2154  ;;  %v1654_v23 = vadd.f32 1.0, %v2153_v46 }
 0x9cf   : > { %v1655_v59 = vadd.f32 1.0, %v2155_v16 }
 0x9d0   : > { %2164 = vrcp.f32 %v1654_v23  ;;  %v2974_v23 = vpop.permute.xlu0 %1906 }
 0x9d1   : > { %v2157_v2 = vpop.eup %2156  ;;  %2166 = vrcp.f32 %v1655_v59 }
 0x9d2   : > { %v2159_v7 = vpop.eup %2158  ;;  %v1656_v43 = vadd.f32 1.0, %v2157_v2 }
 0x9d3   : > { %v1657_v51 = vadd.f32 1.0, %v2159_v7 }
 0x9d5   : > { %2168 = vrcp.f32 %v1657_v51 }
 0x9d6   : > { %2170 = vrcp.f32 %v1656_v43  ;;  %v2161_v10 = vpop.eup %2160 }
 0x9d7   : > { %v2163_v52 = vpop.eup %2162  ;;  %v1664_v1 = vmul.f32 %v2161_v10, %v1628_v11  ;;  %v457_v11 = vld [vmem:[%s3045_s9 + $0x8] sm:$0xff] }
 0x9d8   : > { %v1665_v14 = vmul.f32 %v2163_v52, %v1629_v12  ;;  %v458_v12 = vld [vmem:[%s3045_s9 + $0x10] sm:$0xff] }
 0x9da   : > { %v2165_v34 = vpop.eup %2164 }
 0x9db   : > { %v2167_v24 = vpop.eup %2166  ;;  %v1666_v62 = vmul.f32 %v2165_v34, %v1630_v3  ;;  %v461_v3 = vld [vmem:[%s3045_s9 + $0x28] sm:$0xff] }
 0x9dc   : > { %v1667_v15 = vmul.f32 %v2167_v24, %v1631_v27  ;;  %v462_v27 = vld [vmem:[%s3045_s9 + $0x30] sm:$0xff] }
 0x9dd   : > { %v2106_v18 = vpack.c.bf16 %v1666_v62, %v1664_v1 }
 0x9de   : > { %v2104_v48 = vpack.c.bf16 %v1667_v15, %v1665_v14 }
 0x9df   : > { %v2169_v19 = vpop.eup %2168 }
 0x9e0   : > { %v2171_v26 = vpop.eup %2170  ;;  %v1669_v21 = vmul.f32 %v2169_v19, %v1633_v61  ;;  %2105 = vmatprep.subr.bf16.mxu1 %v2104_v48 }
 0x9e1   : > { %2107 = vmatpush1.bf16.msra.mxu1 %v2106_v18  ;;  %v1668_v22 = vmul.f32 %v2171_v26, %v1632_v38 }
 0x9e2   : > { %2027 = vmatprep.subr.msk.mxu1 %vm1366_vm11, %v1669_v21 }
 0x9e5   : > { %2028 = vmatpush1.msk.msra.mxu1 %vm1366_vm11, %v1668_v22 }
 0x9e6   : > { %2029 = vmatmul.mubr.msk.f32.vlgmr.msra.gmra.mrb[26].mxu1 %vm1372_vm12, %v456_v25 }
 0x9e7   : > { %1773 = vmatprep.mubr.f32.mxu1 %v2182_v0 }
 0x9ea   : > { %2030 = vmatmul.mubr.msk.f32.gmra.mrb[28].mxu1 %vm1372_vm12, %v457_v11 }
 0x9eb   : > { %1779 = vmatprep.mubr.f32.mxu1 %v2182_v0 }
 0x9ee   : > { %2031 = vmatmul.mubr.msk.f32.gmra.mrb[30].mxu1 %vm1372_vm12, %v458_v12 }
 0x9ef   : > { %1785 = vmatprep.mubr.f32.mxu1 %v2182_v0 }
 0x9f2   : > { %2032 = vmatmul.mubr.msk.f32.gmra.mrb[32].mxu1 %vm1372_vm12, %v459_v29 }
 0x9f3   : > { %1791 = vmatprep.mubr.f32.mxu1 %v2182_v0 }
 0x9f6   : > { %2033 = vmatmul.mubr.msk.f32.gmra.mrb[34].mxu1 %vm1372_vm12, %v460_v28 }
 0x9f7   : > { %1797 = vmatprep.mubr.f32.mxu1 %v2182_v0 }
 0x9fa   : > { %2034 = vmatmul.mubr.msk.f32.gmra.mrb[36].mxu1 %vm1372_vm12, %v461_v3 }
 0x9fb   : > { %1803 = vmatprep.mubr.f32.mxu1 %v2182_v0 }
 0x9fe   : > { %2035 = vmatmul.mubr.msk.f32.gmra.mrb[38].mxu1 %vm1372_vm12, %v462_v27 }
 0x9ff   : > { %1809 = vmatprep.mubr.f32.mxu1 %v2182_v0 }
 0xa02   : > { %2036 = vmatmul.mubr.msk.f32.gmra.mrb[40].mxu1 %vm1372_vm12, %v463_v30 }
 0xa03   : > { %1815 = vmatprep.mubr.f32.mxu1 %v2182_v0 }
 0xa06   : > { %2037 = vmatmul.mubr.msk.f32.gmra.mrb[42].mxu1 %vm1372_vm12, %v464_v13 }
 0xab9   : > { %v1769_v49 = vpop.f32.mrb[26].mxu1 }
 0xaba   : > { %v1771_v4 = vpop.f32.mrb[27].mxu1  ;;  %1822 = vrot.lane.b32.xlu0 %v1769_v49, %s2186_s18 }
 0xabb   : > { %1824 = vrot.lane.b32.xlu1 %v1771_v4, %s2186_s18  ;;  %s3052_s18 = smov 111  }
 0xabd   : > { %v1775_v50 = vpop.f32.mrb[28].mxu1 }
 0xabe   : > { %v1777_v60 = vpop.f32.mrb[29].mxu1  ;;  %1832 = vrot.lane.b32.xlu0 %v1775_v50, %s2188_s20 }
 0xabf   : > { %1834 = vrot.lane.b32.xlu1 %v1777_v60, %s2188_s20 }
 0xac1   : > { %v1781_v32 = vpop.f32.mrb[30].mxu1 }
 0xac2   : > { %v1783_v0 = vpop.f32.mrb[31].mxu1  ;;  %1842 = vrot.lane.b32.xlu0 %v1781_v32, %s2189_s24 }
 0xac3   : > { %1844 = vrot.lane.b32.xlu1 %v1783_v0, %s2189_s24 }
 0xac5   : > { %v1787_v38 = vpop.f32.mrb[32].mxu1 }
 0xac6   : > { %v1789_v61 = vpop.f32.mrb[33].mxu1  ;;  %1852 = vrot.lane.b32.xlu0 %v1787_v38, %s2190_s25 }
 0xac7   : > { %1854 = vrot.lane.b32.xlu1 %v1789_v61, %s2190_s25 }
 0xac9   : > { %v1793_v17 = vpop.f32.mrb[34].mxu1 }
 0xaca   : > { %v1795_v63 = vpop.f32.mrb[35].mxu1 }
 0xacd   : > { %v1799_v36 = vpop.f32.mrb[36].mxu1 }
 0xace   : > { %v1801_v58 = vpop.f32.mrb[37].mxu1  ;;  %1864 = vrot.lane.b32.xlu0 %v1799_v36, %s2191_s27 }
 0xacf   : > { %1866 = vrot.lane.b32.xlu1 %v1801_v58, %s2191_s27 }
 0xad1   : > { %v1805_v20 = vpop.f32.mrb[38].mxu1 }
 0xad2   : > { %v1807_v37 = vpop.f32.mrb[39].mxu1  ;;  %1874 = vrot.lane.b32.xlu0 %v1805_v20, %s2192_s28 }
 0xad3   : > { %1876 = vrot.lane.b32.xlu1 %v1807_v37, %s2192_s28 }
 0xad5   : > { %v1811_v47 = vpop.f32.mrb[40].mxu1 }
 0xad6   : > { %v1813_v45 = vpop.f32.mrb[41].mxu1  ;;  %1884 = vrot.lane.b32.xlu0 %v1811_v47, %s2185_s17 }
 0xad7   : > { %1886 = vrot.lane.b32.xlu1 %v1813_v45, %s2185_s17  ;;  %s3053_s17 = sshll.u32 %s3055_s22, 4 }
 0xad8   : > { %s413_s25 = scalar_lea.vmem %s3048_s12, %s3053_s17 }
 0xad9   : > { %v1817_v46 = vpop.f32.mrb[42].mxu1 }
 0xada   : > { %v1819_v16 = vpop.f32.mrb[43].mxu1 }
 0xadb   : > { %1894 = vrot.lane.b32.xlu1 %v1817_v46, %s3052_s18  ;;  %1896 = vrot.lane.b32.xlu0 %v1819_v16, %s3052_s18 }
 0xb2c   : > { %v1823_v59 = vpop.permute.xlu0 %1822 }
 0xb2d   : > { %v1825_v2 = vpop.permute.xlu1 %1824 }
 0xb2e   : > { %v1826_v62 = vsel %vm1009_vm4, %v1823_v59, %v1825_v2  ;;  %v1827_v14 = vsel %vm1009_vm4, %v1825_v2, %v1823_v59 }
 0xb2f   : > { %v1828_v22 = vmul.f32 %v1827_v14, %v2595_v53  ;;  %v1829_v25 = vmul.f32 %v1826_v62, %v2598_v54 }
 0xb30   : > { %v1833_v7 = vpop.permute.xlu0 %1832 }
 0xb31   : > { %v1835_v43 = vpop.permute.xlu1 %1834 }
 0xb32   : > { %v1836_v52 = vsel %vm1051_vm5, %v1833_v7, %v1835_v43  ;;  %v1837_v34 = vsel %vm1051_vm5, %v1835_v43, %v1833_v7 }
 0xb33   : > { %v1838_v48 = vmul.f32 %v1837_v34, %v2584_v41  ;;  %v1839_v19 = vmul.f32 %v1836_v52, %v2587_v42  ;;  %v2172_v52 = vld [vmem:[%s2277_s26] sm:$0x3f]  ;;  %v2173_v34 = vld [vmem:[%s2277_s26 + $0x8] sm:$0x3f] }
 0xb34   : > { %v1843_v51 = vpop.permute.xlu0 %1842 }
 0xb35   : > { %v1845_v10 = vpop.permute.xlu1 %1844  ;;  %v1840_v28 = vadd.f32 %v1838_v48, %v1828_v22  ;;  %v1841_v3 = vadd.f32 %v1839_v19, %v1829_v25 }
 0xb36   : > { %v1846_v15 = vsel %vm1093_vm6, %v1843_v51, %v1845_v10  ;;  %v1847_v18 = vsel %vm1093_vm6, %v1845_v10, %v1843_v51 }
 0xb37   : > { %v1848_v11 = vmul.f32 %v1847_v18, %v2601_v55  ;;  %v1849_v12 = vmul.f32 %v1846_v15, %v2604_v56 }
 0xb38   : > { %v1853_v24 = vpop.permute.xlu0 %1852 }
 0xb39   : > { %v1855_v1 = vpop.permute.xlu1 %1854  ;;  %v1850_v30 = vadd.f32 %v1848_v11, %v1840_v28  ;;  %v1851_v13 = vadd.f32 %v1849_v12, %v1841_v3 }
 0xb3a   : > { %v1856_v26 = vsel %vm1135_vm7, %v1853_v24, %v1855_v1  ;;  %v1857_v21 = vsel %vm1135_vm7, %v1855_v1, %v1853_v24 }
 0xb3b   : > { %v1858_v41 = vmul.f32 %v1857_v21, %v2623_v5  ;;  %v1859_v42 = vmul.f32 %v1856_v26, %v2626_v6 }
 0xb3d   : > { %v1860_v55 = vadd.f32 %v1858_v41, %v1850_v30  ;;  %v1861_v4 = vadd.f32 %v1859_v42, %v1851_v13 }
 0xb3f   : > { %v1862_v0 = vadd.f32 %v1860_v55, %v1793_v17  ;;  %v1863_v38 = vadd.f32 %v1861_v4, %v1795_v63 }
 0xb40   : > { %v1865_v29 = vpop.permute.xlu0 %1864 }
 0xb41   : > { %v1867_v27 = vpop.permute.xlu1 %1866 }
 0xb42   : > { %v1868_v49 = vsel %vm1183_vm8, %v1865_v29, %v1867_v27  ;;  %v1869_v53 = vsel %vm1183_vm8, %v1867_v27, %v1865_v29 }
 0xb43   : > { %v1870_v6 = vmul.f32 %v1868_v49, %v2679_v33  ;;  %v1871_v60 = vmul.f32 %v1869_v53, %v2682_v35 }
 0xb44   : > { %v1875_v54 = vpop.permute.xlu0 %1874 }
 0xb45   : > { %v1877_v56 = vpop.permute.xlu1 %1876  ;;  %v1872_v47 = vadd.f32 %v1870_v6, %v1862_v0  ;;  %v1873_v45 = vadd.f32 %v1871_v60, %v1863_v38 }
 0xb46   : > { %v1878_v50 = vsel %vm1225_vm9, %v1875_v54, %v1877_v56  ;;  %v1879_v5 = vsel %vm1225_vm9, %v1877_v56, %v1875_v54 }
 0xb47   : > { %v1880_v61 = vmul.f32 %v1878_v50, %v2703_v9  ;;  %v1881_v36 = vmul.f32 %v1879_v5, %v2706_v31 }
 0xb48   : > { %v1885_v32 = vpop.permute.xlu0 %1884 }
 0xb49   : > { %v1887_v58 = vpop.permute.xlu1 %1886  ;;  %v1882_v17 = vadd.f32 %v1880_v61, %v1872_v47  ;;  %v1883_v63 = vadd.f32 %v1881_v36, %v1873_v45 }
 0xb4a   : > { %v1888_v20 = vsel %vm1267_vm3, %v1885_v32, %v1887_v58  ;;  %v1889_v37 = vsel %vm1267_vm3, %v1887_v58, %v1885_v32 }
 0xb4b   : > { %v1890_v33 = vmul.f32 %v1888_v20, %v2725_v39  ;;  %v1891_v35 = vmul.f32 %v1889_v37, %v2728_v44 }
 0xb4d   : > { %v1895_v9 = vpop.permute.xlu1 %1894  ;;  %v1897_v31 = vpop.permute.xlu0 %1896  ;;  %v1892_v59 = vadd.f32 %v1890_v33, %v1882_v17  ;;  %v1893_v2 = vadd.f32 %v1891_v35, %v1883_v63 }
 0xb4e   : > { %v1898_v46 = vsel %vm1309_vm10, %v1895_v9, %v1897_v31  ;;  %v1899_v16 = vsel %vm1309_vm10, %v1897_v31, %v1895_v9 }
 0xb4f   : > { %v1900_v7 = vmul.f32 %v1898_v46, %v2732_v40  ;;  %v1901_v39 = vmul.f32 %v1899_v16, %v2735_v57 }
 0xb51   : > { %v1902_v43 = vadd.f32 %v1900_v7, %v1892_v59  ;;  %v1903_v44 = vadd.f32 %v1901_v39, %v1893_v2 }
 0xb53   : > { %v1909_v51 = vadd.f32 %v2974_v23, %v1902_v43  ;;  %v1910_v10 = vadd.f32 %v2974_v23, %v1903_v44 }
 0xb55   : > { %v1911_v8 = vadd.f32 %v2172_v52, %v1909_v51  ;;  %v1912_v24 = vadd.f32 %v2173_v34, %v1910_v10 }
 0xb57   : > { %1913 = vst [vmem:[%s413_s25] sm:$0x3f] %v1911_v8  ;;  %1914 = vst [vmem:[%s413_s25 + $0x8] sm:$0x3f] %v1912_v24 }
 0xb58 PF: > { %s22_s21 = sadd.s32 1, %s2180_s21  }
 0xb59   : > { %p19_p4 = scmp.ge.s32.totalorder %s22_s21, 4  }
 0xb5b   :  { %21 = sbr.rel (!%p19_p4) target bundleno = 1 (0x1), region = 105 }

</bundles_post_ra>
